<compile_context>
chip_gen: v7x
topology: tpu7x:2x2x1
jax: 0.10.0
libtpu: 0.0.40
codegen_flags: <defaults>
</compile_context>

<pallas_src>
from functools import partial

import jax
import jax.numpy as jnp
from jax import lax
from jax.experimental import pallas as pl
from jax.experimental.pallas import tpu as pltpu

LRELU_SLOPE = 0.2          # nn.LeakyReLU(0.2) from get_acti_layer('lrelu')
EPS = 1e-5                 # AdaptiveInstanceNorm1d eps (F.batch_norm default)
MM_DTYPE = jnp.bfloat16    # MXU input dtype for conv matmuls (f32 accumulate)


# ------------------------------ fused kernel ---------------------------------
def _make_decoder_kernel(T0, K, n_res, n_up, mm_dtype):
    def lrelu(v):
        return jnp.where(v >= 0, v, LRELU_SLOPE * v)

    def mxu(a, w):
        # bf16 (or f32) MXU inputs, f32 accumulation.
        return jnp.dot(a.astype(mm_dtype), w.astype(mm_dtype),
                       preferred_element_type=jnp.float32)

    def kernel(*refs):
        x_ref, gamma_ref, beta_ref = refs[0], refs[1], refs[2]
        out_ref = refs[-1]
        wrefs = refs[3:-1]
        it = iter(wrefs)
        res_refs = [tuple(next(it) for _ in range(6)) for _ in range(n_res)]
        up_refs = [tuple(next(it) for _ in range(2)) for _ in range(n_up)]

        # Row-index iotas, built once per distinct T (JAX does not CSE these).
        iota_cache = {}

        def row_iota(T):
            if T not in iota_cache:
                iota_cache[T] = lax.broadcasted_iota(jnp.int32, (T, 1), 0)
            return iota_cache[T]

        def reflect_shift(h, o):
            # shifted[t] = h[reflect(t + o)] per PyTorch ReflectionPad1d,
            # built as one XLU sublane rotation + |o| boundary-row selects.
            T = h.shape[0]
            if o == 0:
                return h
            shifted = pltpu.roll(h, shift=(-o) % T, axis=0)
            row = row_iota(T)
            if o < 0:
                # rows t in [0, -o-1] need h[-(t + o)]
                for t in range(-o):
                    src = -o - t
                    shifted = jnp.where(row == t, h[src:src + 1, :], shifted)
            else:
                # rows t in [T-o, T-1] need h[2*(T-1) - t - o]
                for t in range(T - o, T):
                    src = 2 * (T - 1) - t - o
                    shifted = jnp.where(row == t, h[src:src + 1, :], shifted)
            return shifted

        def conv_block(h, w_ref, b_ref, k, acti):
            # h: (T, Cin) f32, channels-last.
            # ConvBlock = ReflectionPad1d((k-1)//2) -> Conv1d(k, stride=1)
            #             -> norm('none') -> activation,
            # realised as k accumulating (T,Cin)@(Cin,Cout) MXU matmuls over
            # rolled (shifted) views of h.  Weight layout: (k*Cin, Cout) with
            # w[j*Cin + c, o] == torch_conv.weight[o, c, j].
            T, Cin = h.shape
            p = (k - 1) // 2
            bias = b_ref[...].astype(jnp.float32)          # (1, Cout)
            w = w_ref[...]                                  # (k*Cin, Cout)
            if k == 1:
                y = mxu(h, w)
            else:
                assert p < T, "reflection pad requires pad < T"
                y = None
                for j in range(k):
                    shifted = reflect_shift(h, j - p)
                    contrib = mxu(shifted, w[j * Cin:(j + 1) * Cin, :])
                    y = contrib if y is None else y + contrib
            y = y + bias
            if acti == 'lrelu':
                y = lrelu(y)
            return y                                        # (T, Cout) f32

        # ---- AdaIN on this batch sample's (T0, C0) channels-last tile.
        #      Instance norm over time per channel, biased variance
        #      (F.batch_norm, training=True), then per-(b, c) affine.
        h = x_ref[...].astype(jnp.float32)                  # (T0, C0)
        mean = jnp.mean(h, axis=0, keepdims=True)           # (1, C0)
        var = jnp.mean((h - mean) ** 2, axis=0, keepdims=True)
        h = (h - mean) * lax.rsqrt(var + EPS)
        h = (gamma_ref[...].astype(jnp.float32) * h
             + beta_ref[...].astype(jnp.float32))

        # ---- BottleNeck residual blocks: 1x1 -> KxK -> 1x1 (+ identity skip),
        #      res_norm='none', acti='lrelu' (last conv of the block: 'none').
        for (w1, b1, w2, b2, w3, b3) in res_refs:
            y = conv_block(h, w1, b1, 1, 'lrelu')
            y = conv_block(y, w2, b2, K, 'lrelu')
            y = conv_block(y, w3, b3, 1, 'none')
            h = h + y                                       # residual add (f32)

        # ---- [nearest x2 Upsample + ConvBlock] * n_up (last block acti='none').
        #      Upsample = O(T*C) row duplication (sublane broadcast + reshape),
        #      no dense selection matrix.
        T = T0
        for i, (w_up, b_up) in enumerate(up_refs):
            C = h.shape[-1]
            h = jnp.reshape(jnp.broadcast_to(h[:, None, :], (T, 2, C)),
                            (2 * T, C))
            T = 2 * T
            h = conv_block(h, w_up, b_up, K,
                           'none' if i == n_up - 1 else 'lrelu')

        # ---- Store channels-last; the NWC->NCW transpose lives in the wrapper.
        out_ref[...] = h.astype(out_ref.dtype)

    return kernel


# --------------------------------- wrapper -----------------------------------
@partial(jax.jit, static_argnames=("kernel_size",))
def decoder_forward(params, x_ncw, *, kernel_size):
    """Decoder forward. x_ncw: (B, C0, T) NCW -> (B, C_last, T * 2**n_up) NCW."""
    B, C0, T0 = x_ncw.shape
    n_res = len(params['resblocks'])
    n_up = len(params['upconvs'])
    if n_up:
        c_last = params['upconvs'][-1]['w'].shape[-1]
    elif n_res:
        c_last = params['resblocks'][-1]['w3'].shape[-1]
    else:
        c_last = C0
    t_out = T0 * (2 ** n_up)

    # Channels-last input / output: layout transposes are cheap XLA passes in
    # the wrapper, so the kernel never spends MXU/XLU/VMEM on them.
    x_nwc = jnp.transpose(x_ncw, (0, 2, 1))                 # (B, T0, C0)

    flat = [x_nwc, params['adain_gamma'], params['adain_beta']]
    specs = [
        pl.BlockSpec((None, T0, C0), lambda b: (b, 0, 0)),
        pl.BlockSpec((None, 1, C0), lambda b: (b, 0, 0)),
        pl.BlockSpec((None, 1, C0), lambda b: (b, 0, 0)),
    ]

    def add_conv(w, bias):
        # Weights are only MXU inputs -> ship them bf16 (halves DMA/residency).
        flat.append(w.astype(MM_DTYPE))
        specs.append(pl.BlockSpec(w.shape, lambda b: (0, 0)))   # stays resident
        flat.append(bias)                                       # bias stays f32
        specs.append(pl.BlockSpec(bias.shape, lambda b: (0, 0)))

    for blk in params['resblocks']:
        add_conv(blk['w1'], blk['b1'])
        add_conv(blk['w2'], blk['b2'])
        add_conv(blk['w3'], blk['b3'])
    for up in params['upconvs']:
        add_conv(up['w'], up['b'])

    kernel = _make_decoder_kernel(T0, kernel_size, n_res, n_up, MM_DTYPE)
    out_nwc = pl.pallas_call(
        kernel,
        out_shape=jax.ShapeDtypeStruct((B, t_out, c_last), x_ncw.dtype),
        grid=(B,),
        in_specs=specs,
        out_specs=pl.BlockSpec((None, t_out, c_last), lambda b: (b, 0, 0)),
        compiler_params=pltpu.CompilerParams(
            dimension_semantics=("parallel",),
            # Tiny at test shapes; re-derive with T-tiling for realistic T
            # (64 MiB VMEM on v7x, 128 MiB on v5e/v6e).
            vmem_limit_bytes=32 * 1024 * 1024),
    )(*flat)
    return jnp.transpose(out_nwc, (0, 2, 1))                # back to NCW


# ------------------------------- parameters ----------------------------------
def _conv_params(key, k, cin, cout):
    # nn.Conv1d default init: U(-1/sqrt(cin*k), +1/sqrt(cin*k)).
    # Weight layout is the im2col-flattened form used by the kernel:
    #   w_flat[j*cin + c, o]  ==  torch_conv.weight[o, c, j]
    kw, kb = jax.random.split(key)
    scale = 1.0 / (cin * k) ** 0.5
    w = jax.random.uniform(kw, (k * cin, cout), jnp.float32, -scale, scale)
    b = jax.random.uniform(kb, (1, cout), jnp.float32, -scale, scale)
    return w, b


def init_decoder_params(key, *, B, channels, kernel_size, n_resblk, n_up, bt_channel):
    keys = jax.random.split(key, 2 + 3 * n_resblk + n_up)
    ki = iter(keys)
    c0 = channels[0]
    params = {
        # In the original model the AdaIN weight/bias are assigned at runtime
        # from a style code (assign_adain_params); synthesized here.
        'adain_gamma': 1.0 + 0.1 * jax.random.normal(next(ki), (B, 1, c0), jnp.float32),
        'adain_beta': 0.1 * jax.random.normal(next(ki), (B, 1, c0), jnp.float32),
        'resblocks': [],
        'upconvs': [],
    }
    # BottleNeckResBlock: 1x1 reduce -> KxK -> 1x1 expand, identity skip.
    for _ in range(n_resblk):
        w1, b1 = _conv_params(next(ki), 1, c0, bt_channel)
        w2, b2 = _conv_params(next(ki), kernel_size, bt_channel, bt_channel)
        w3, b3 = _conv_params(next(ki), 1, bt_channel, c0)
        params['resblocks'].append(dict(w1=w1, b1=b1, w2=w2, b2=b2, w3=w3, b3=b3))
    for i in range(n_up):
        w, b = _conv_params(next(ki), kernel_size, channels[i], channels[i + 1])
        params['upconvs'].append(dict(w=w, b=b))
    return params


# ------------------------- pure-JAX f32 reference ----------------------------
def decoder_reference(params, x_ncw, *, kernel_size):
    """Pure-JAX f32 reference with the PyTorch module's semantics."""
    x = jnp.transpose(x_ncw, (0, 2, 1)).astype(jnp.float32)       # (B, T, C)
    mean = jnp.mean(x, axis=1, keepdims=True)
    var = jnp.mean((x - mean) ** 2, axis=1, keepdims=True)
    x = params['adain_gamma'] * (x - mean) * lax.rsqrt(var + EPS) + params['adain_beta']

    def conv(h, w_flat, bias, k, acti):
        T = h.shape[1]
        p = (k - 1) // 2
        hp = jnp.pad(h, ((0, 0), (p, p), (0, 0)), mode='reflect') if p else h
        patches = jnp.concatenate([hp[:, i:i + T, :] for i in range(k)], axis=-1)
        y = jnp.einsum('btk,ko->bto', patches, w_flat) + bias
        return jnp.where(y >= 0, y, LRELU_SLOPE * y) if acti == 'lrelu' else y

    for blk in params['resblocks']:
        h = conv(x, blk['w1'], blk['b1'], 1, 'lrelu')
        h = conv(h, blk['w2'], blk['b2'], kernel_size, 'lrelu')
        h = conv(h, blk['w3'], blk['b3'], 1, 'none')
        x = x + h
    n_up = len(params['upconvs'])
    for i, up in enumerate(params['upconvs']):
        x = jnp.repeat(x, 2, axis=1)                               # nearest x2
        x = conv(x, up['w'], up['b'], kernel_size,
                 'none' if i == n_up - 1 else 'lrelu')
    return jnp.transpose(x, (0, 2, 1))                             # back to NCW


# ----------------------------------- main ------------------------------------
if __name__ == "__main__":
    # Small synthetic config consistent with Decoder.__init__:
    #   dec_channels=(32, 16, 8), dec_kernel_size=3, dec_stride=1,
    #   dec_resblks=2, dec_up_n=2, dec_bt_channel=16
    B, T = 2, 8
    channels = (32, 16, 8)
    kernel_size = 3
    n_resblk = 2
    n_up = 2
    bt_channel = 16

    key = jax.random.PRNGKey(0)
    kp, kx = jax.random.split(key)
    params = init_decoder_params(
        kp, B=B, channels=channels, kernel_size=kernel_size,
        n_resblk=n_resblk, n_up=n_up, bt_channel=bt_channel)

    x = jax.random.normal(kx, (B, channels[0], T), jnp.float32)    # PyTorch NCW input

    y = decoder_forward(params, x, kernel_size=kernel_size)
    y = jax.block_until_ready(y)

    assert y.shape == (B, channels[-1], T * 2 ** n_up), y.shape
    assert bool(jnp.all(jnp.isfinite(y)))

    # Self-check against the exact f32 reference (tolerance sized for the
    # bf16 MXU inputs; set MM_DTYPE = jnp.float32 for ~1e-5 agreement).
    y_ref = decoder_reference(params, x, kernel_size=kernel_size)
    max_err = float(jnp.max(jnp.abs(y - y_ref)))
    assert max_err < 5e-2, f"max abs error vs f32 reference: {max_err}"

    print("KERNEL_OK")
</pallas_src>

<mosaic_0001>
module attributes {stable_mosaic.version = 11 : i64} {
  func.func @kernel(%arg0: i32, %arg1: memref<1x8x32xf32, #tpu.memory_space<vmem>>, %arg2: memref<1x1x32xf32, #tpu.memory_space<vmem>>, %arg3: memref<1x1x32xf32, #tpu.memory_space<vmem>>, %arg4: memref<32x16xbf16, #tpu.memory_space<vmem>>, %arg5: memref<1x16xf32, #tpu.memory_space<vmem>>, %arg6: memref<48x16xbf16, #tpu.memory_space<vmem>>, %arg7: memref<1x16xf32, #tpu.memory_space<vmem>>, %arg8: memref<16x32xbf16, #tpu.memory_space<vmem>>, %arg9: memref<1x32xf32, #tpu.memory_space<vmem>>, %arg10: memref<32x16xbf16, #tpu.memory_space<vmem>>, %arg11: memref<1x16xf32, #tpu.memory_space<vmem>>, %arg12: memref<48x16xbf16, #tpu.memory_space<vmem>>, %arg13: memref<1x16xf32, #tpu.memory_space<vmem>>, %arg14: memref<16x32xbf16, #tpu.memory_space<vmem>>, %arg15: memref<1x32xf32, #tpu.memory_space<vmem>>, %arg16: memref<96x16xbf16, #tpu.memory_space<vmem>>, %arg17: memref<1x16xf32, #tpu.memory_space<vmem>>, %arg18: memref<48x8xbf16, #tpu.memory_space<vmem>>, %arg19: memref<1x8xf32, #tpu.memory_space<vmem>>, %arg20: memref<1x32x8xf32, #tpu.memory_space<vmem>>) attributes {dimension_semantics = [#tpu.dimension_semantics<parallel>], iteration_bounds = array<i64: 2>, scalar_prefetch = 0 : i64, scratch_operands = 0 : i64, tpu.core_type = #tpu.core_type<tc>, window_params = [{transform_indices = @transform_0, window_bounds = array<i64: 1, 8, 32>}, {transform_indices = @transform_1, window_bounds = array<i64: 1, 1, 32>}, {transform_indices = @transform_2, window_bounds = array<i64: 1, 1, 32>}, {pipeline_mode = #tpu.pipeline_mode<synchronous>, transform_indices = @transform_3, window_bounds = array<i64: 32, 16>}, {pipeline_mode = #tpu.pipeline_mode<synchronous>, transform_indices = @transform_4, window_bounds = array<i64: 1, 16>}, {pipeline_mode = #tpu.pipeline_mode<synchronous>, transform_indices = @transform_5, window_bounds = array<i64: 48, 16>}, {pipeline_mode = #tpu.pipeline_mode<synchronous>, transform_indices = @transform_6, window_bounds = array<i64: 1, 16>}, {pipeline_mode = #tpu.pipeline_mode<synchronous>, transform_indices = @transform_7, window_bounds = array<i64: 16, 32>}, {pipeline_mode = #tpu.pipeline_mode<synchronous>, transform_indices = @transform_8, window_bounds = array<i64: 1, 32>}, {pipeline_mode = #tpu.pipeline_mode<synchronous>, transform_indices = @transform_9, window_bounds = array<i64: 32, 16>}, {pipeline_mode = #tpu.pipeline_mode<synchronous>, transform_indices = @transform_10, window_bounds = array<i64: 1, 16>}, {pipeline_mode = #tpu.pipeline_mode<synchronous>, transform_indices = @transform_11, window_bounds = array<i64: 48, 16>}, {pipeline_mode = #tpu.pipeline_mode<synchronous>, transform_indices = @transform_12, window_bounds = array<i64: 1, 16>}, {pipeline_mode = #tpu.pipeline_mode<synchronous>, transform_indices = @transform_13, window_bounds = array<i64: 16, 32>}, {pipeline_mode = #tpu.pipeline_mode<synchronous>, transform_indices = @transform_14, window_bounds = array<i64: 1, 32>}, {pipeline_mode = #tpu.pipeline_mode<synchronous>, transform_indices = @transform_15, window_bounds = array<i64: 96, 16>}, {pipeline_mode = #tpu.pipeline_mode<synchronous>, transform_indices = @transform_16, window_bounds = array<i64: 1, 16>}, {pipeline_mode = #tpu.pipeline_mode<synchronous>, transform_indices = @transform_17, window_bounds = array<i64: 48, 8>}, {pipeline_mode = #tpu.pipeline_mode<synchronous>, transform_indices = @transform_18, window_bounds = array<i64: 1, 8>}, {transform_indices = @transform_19, window_bounds = array<i64: 1, 32, 8>}]} {
    %c0 = arith.constant 0 : index
    %c0_0 = arith.constant 0 : index
    %c0_1 = arith.constant 0 : index
    %0 = vector.load %arg1[%c0, %c0_0, %c0_1] : memref<1x8x32xf32, #tpu.memory_space<vmem>>, vector<1x8x32xf32>
    %1 = vector.shape_cast %0 : vector<1x8x32xf32> to vector<8x32xf32>
    %cst = arith.constant dense<0.000000e+00> : vector<32xf32>
    %2 = vector.multi_reduction <add>, %1, %cst [0] : vector<8x32xf32> to vector<32xf32>
    %3 = vector.shape_cast %2 : vector<32xf32> to vector<1x32xf32>
    %cst_2 = arith.constant 8.000000e+00 : f32
    %4 = vector.broadcast %cst_2 : f32 to vector<1x32xf32>
    %5 = arith.divf %3, %4 : vector<1x32xf32>
    %6 = vector.broadcast %5 : vector<1x32xf32> to vector<8x32xf32>
    %7 = arith.subf %1, %6 : vector<8x32xf32>
    %8 = arith.mulf %7, %7 : vector<8x32xf32>
    %cst_3 = arith.constant dense<0.000000e+00> : vector<32xf32>
    %9 = vector.multi_reduction <add>, %8, %cst_3 [0] : vector<8x32xf32> to vector<32xf32>
    %10 = vector.shape_cast %9 : vector<32xf32> to vector<1x32xf32>
    %cst_4 = arith.constant 8.000000e+00 : f32
    %11 = vector.broadcast %cst_4 : f32 to vector<1x32xf32>
    %12 = arith.divf %10, %11 : vector<1x32xf32>
    %13 = vector.broadcast %5 : vector<1x32xf32> to vector<8x32xf32>
    %14 = arith.subf %1, %13 : vector<8x32xf32>
    %cst_5 = arith.constant 9.99999974E-6 : f32
    %15 = vector.broadcast %cst_5 : f32 to vector<1x32xf32>
    %16 = arith.addf %12, %15 : vector<1x32xf32>
    %17 = math.rsqrt %16 : vector<1x32xf32>
    %18 = vector.broadcast %17 : vector<1x32xf32> to vector<8x32xf32>
    %19 = arith.mulf %14, %18 : vector<8x32xf32>
    %c0_6 = arith.constant 0 : index
    %c0_7 = arith.constant 0 : index
    %c0_8 = arith.constant 0 : index
    %20 = vector.load %arg2[%c0_6, %c0_7, %c0_8] : memref<1x1x32xf32, #tpu.memory_space<vmem>>, vector<1x1x32xf32>
    %21 = vector.shape_cast %20 : vector<1x1x32xf32> to vector<1x32xf32>
    %22 = vector.broadcast %21 : vector<1x32xf32> to vector<8x32xf32>
    %23 = arith.mulf %22, %19 : vector<8x32xf32>
    %c0_9 = arith.constant 0 : index
    %c0_10 = arith.constant 0 : index
    %c0_11 = arith.constant 0 : index
    %24 = vector.load %arg3[%c0_9, %c0_10, %c0_11] : memref<1x1x32xf32, #tpu.memory_space<vmem>>, vector<1x1x32xf32>
    %25 = vector.shape_cast %24 : vector<1x1x32xf32> to vector<1x32xf32>
    %26 = vector.broadcast %25 : vector<1x32xf32> to vector<8x32xf32>
    %27 = arith.addf %23, %26 : vector<8x32xf32>
    %c0_12 = arith.constant 0 : index
    %c0_13 = arith.constant 0 : index
    %28 = vector.load %arg5[%c0_12, %c0_13] : memref<1x16xf32, #tpu.memory_space<vmem>>, vector<1x16xf32>
    %c0_14 = arith.constant 0 : index
    %c0_15 = arith.constant 0 : index
    %29 = vector.load %arg4[%c0_14, %c0_15] : memref<32x16xbf16, #tpu.memory_space<vmem>>, vector<32x16xbf16>
    %30 = arith.truncf %27 : vector<8x32xf32> to vector<8x32xbf16>
    %cst_16 = arith.constant dense<0.000000e+00> : vector<8x16xf32>
    %31 = tpu.matmul %30, %29, %cst_16 {dimension_numbers = #tpu.dot_dimension_numbers<[1], [0], [0], [1], [0, 0, 1, 1], [], []>} : vector<8x32xbf16>, vector<32x16xbf16>, vector<8x16xf32> -> vector<8x16xf32>
    %32 = vector.broadcast %28 : vector<1x16xf32> to vector<8x16xf32>
    %33 = arith.addf %31, %32 : vector<8x16xf32>
    %cst_17 = arith.constant 0.000000e+00 : f32
    %34 = vector.broadcast %cst_17 : f32 to vector<8x16xf32>
    %35 = arith.cmpf oge, %33, %34 : vector<8x16xf32>
    %cst_18 = arith.constant 2.000000e-01 : f32
    %36 = vector.broadcast %cst_18 : f32 to vector<8x16xf32>
    %37 = arith.mulf %36, %33 : vector<8x16xf32>
    %38 = arith.select %35, %33, %37 : vector<8x16xi1>, vector<8x16xf32>
    %c0_19 = arith.constant 0 : index
    %c0_20 = arith.constant 0 : index
    %39 = vector.load %arg7[%c0_19, %c0_20] : memref<1x16xf32, #tpu.memory_space<vmem>>, vector<1x16xf32>
    %c0_21 = arith.constant 0 : index
    %c0_22 = arith.constant 0 : index
    %40 = vector.load %arg6[%c0_21, %c0_22] : memref<48x16xbf16, #tpu.memory_space<vmem>>, vector<48x16xbf16>
    %c1_i32 = arith.constant 1 : i32
    %41 = tpu.dynamic_rotate %38 by %c1_i32 dim 0 : vector<8x16xf32>, i32 -> vector<8x16xf32>
    %42 = tpu.iota {dimensions = array<i32: 0>} : vector<8x1xi32>
    %c0_i32 = arith.constant 0 : i32
    %43 = vector.broadcast %c0_i32 : i32 to vector<8x1xi32>
    %44 = arith.cmpi eq, %42, %43 : vector<8x1xi32>
    %45 = vector.extract_strided_slice %38 {offsets = [1, 0], sizes = [1, 16], strides = [1, 1]} : vector<8x16xf32> to vector<1x16xf32>
    %46 = vector.shape_cast %44 : vector<8x1xi1> to vector<8x1xi1>
    %47 = vector.broadcast %46 : vector<8x1xi1> to vector<8x16xi1>
    %48 = vector.shape_cast %45 : vector<1x16xf32> to vector<1x16xf32>
    %49 = vector.broadcast %48 : vector<1x16xf32> to vector<8x16xf32>
    %50 = arith.select %47, %49, %41 : vector<8x16xi1>, vector<8x16xf32>
    %51 = vector.extract_strided_slice %40 {offsets = [0, 0], sizes = [16, 16], strides = [1, 1]} : vector<48x16xbf16> to vector<16x16xbf16>
    %52 = arith.truncf %50 : vector<8x16xf32> to vector<8x16xbf16>
    %cst_23 = arith.constant dense<0.000000e+00> : vector<8x16xf32>
    %53 = tpu.matmul %52, %51, %cst_23 {dimension_numbers = #tpu.dot_dimension_numbers<[1], [0], [0], [1], [0, 0, 1, 1], [], []>} : vector<8x16xbf16>, vector<16x16xbf16>, vector<8x16xf32> -> vector<8x16xf32>
    %54 = vector.extract_strided_slice %40 {offsets = [16, 0], sizes = [16, 16], strides = [1, 1]} : vector<48x16xbf16> to vector<16x16xbf16>
    %55 = arith.truncf %38 : vector<8x16xf32> to vector<8x16xbf16>
    %cst_24 = arith.constant dense<0.000000e+00> : vector<8x16xf32>
    %56 = tpu.matmul %55, %54, %cst_24 {dimension_numbers = #tpu.dot_dimension_numbers<[1], [0], [0], [1], [0, 0, 1, 1], [], []>} : vector<8x16xbf16>, vector<16x16xbf16>, vector<8x16xf32> -> vector<8x16xf32>
    %57 = arith.addf %53, %56 : vector<8x16xf32>
    %c7_i32 = arith.constant 7 : i32
    %58 = tpu.dynamic_rotate %38 by %c7_i32 dim 0 : vector<8x16xf32>, i32 -> vector<8x16xf32>
    %c7_i32_25 = arith.constant 7 : i32
    %59 = vector.broadcast %c7_i32_25 : i32 to vector<8x1xi32>
    %60 = arith.cmpi eq, %42, %59 : vector<8x1xi32>
    %61 = vector.extract_strided_slice %38 {offsets = [6, 0], sizes = [1, 16], strides = [1, 1]} : vector<8x16xf32> to vector<1x16xf32>
    %62 = vector.shape_cast %60 : vector<8x1xi1> to vector<8x1xi1>
    %63 = vector.broadcast %62 : vector<8x1xi1> to vector<8x16xi1>
    %64 = vector.shape_cast %61 : vector<1x16xf32> to vector<1x16xf32>
    %65 = vector.broadcast %64 : vector<1x16xf32> to vector<8x16xf32>
    %66 = arith.select %63, %65, %58 : vector<8x16xi1>, vector<8x16xf32>
    %67 = vector.extract_strided_slice %40 {offsets = [32, 0], sizes = [16, 16], strides = [1, 1]} : vector<48x16xbf16> to vector<16x16xbf16>
    %68 = arith.truncf %66 : vector<8x16xf32> to vector<8x16xbf16>
    %cst_26 = arith.constant dense<0.000000e+00> : vector<8x16xf32>
    %69 = tpu.matmul %68, %67, %cst_26 {dimension_numbers = #tpu.dot_dimension_numbers<[1], [0], [0], [1], [0, 0, 1, 1], [], []>} : vector<8x16xbf16>, vector<16x16xbf16>, vector<8x16xf32> -> vector<8x16xf32>
    %70 = arith.addf %57, %69 : vector<8x16xf32>
    %71 = vector.broadcast %39 : vector<1x16xf32> to vector<8x16xf32>
    %72 = arith.addf %70, %71 : vector<8x16xf32>
    %cst_27 = arith.constant 0.000000e+00 : f32
    %73 = vector.broadcast %cst_27 : f32 to vector<8x16xf32>
    %74 = arith.cmpf oge, %72, %73 : vector<8x16xf32>
    %cst_28 = arith.constant 2.000000e-01 : f32
    %75 = vector.broadcast %cst_28 : f32 to vector<8x16xf32>
    %76 = arith.mulf %75, %72 : vector<8x16xf32>
    %77 = arith.select %74, %72, %76 : vector<8x16xi1>, vector<8x16xf32>
    %c0_29 = arith.constant 0 : index
    %c0_30 = arith.constant 0 : index
    %78 = vector.load %arg9[%c0_29, %c0_30] : memref<1x32xf32, #tpu.memory_space<vmem>>, vector<1x32xf32>
    %c0_31 = arith.constant 0 : index
    %c0_32 = arith.constant 0 : index
    %79 = vector.load %arg8[%c0_31, %c0_32] : memref<16x32xbf16, #tpu.memory_space<vmem>>, vector<16x32xbf16>
    %80 = arith.truncf %77 : vector<8x16xf32> to vector<8x16xbf16>
    %cst_33 = arith.constant dense<0.000000e+00> : vector<8x32xf32>
    %81 = tpu.matmul %80, %79, %cst_33 {dimension_numbers = #tpu.dot_dimension_numbers<[1], [0], [0], [1], [0, 0, 1, 1], [], []>} : vector<8x16xbf16>, vector<16x32xbf16>, vector<8x32xf32> -> vector<8x32xf32>
    %82 = vector.broadcast %78 : vector<1x32xf32> to vector<8x32xf32>
    %83 = arith.addf %81, %82 : vector<8x32xf32>
    %84 = arith.addf %27, %83 : vector<8x32xf32>
    %c0_34 = arith.constant 0 : index
    %c0_35 = arith.constant 0 : index
    %85 = vector.load %arg11[%c0_34, %c0_35] : memref<1x16xf32, #tpu.memory_space<vmem>>, vector<1x16xf32>
    %c0_36 = arith.constant 0 : index
    %c0_37 = arith.constant 0 : index
    %86 = vector.load %arg10[%c0_36, %c0_37] : memref<32x16xbf16, #tpu.memory_space<vmem>>, vector<32x16xbf16>
    %87 = arith.truncf %84 : vector<8x32xf32> to vector<8x32xbf16>
    %cst_38 = arith.constant dense<0.000000e+00> : vector<8x16xf32>
    %88 = tpu.matmul %87, %86, %cst_38 {dimension_numbers = #tpu.dot_dimension_numbers<[1], [0], [0], [1], [0, 0, 1, 1], [], []>} : vector<8x32xbf16>, vector<32x16xbf16>, vector<8x16xf32> -> vector<8x16xf32>
    %89 = vector.broadcast %85 : vector<1x16xf32> to vector<8x16xf32>
    %90 = arith.addf %88, %89 : vector<8x16xf32>
    %cst_39 = arith.constant 0.000000e+00 : f32
    %91 = vector.broadcast %cst_39 : f32 to vector<8x16xf32>
    %92 = arith.cmpf oge, %90, %91 : vector<8x16xf32>
    %cst_40 = arith.constant 2.000000e-01 : f32
    %93 = vector.broadcast %cst_40 : f32 to vector<8x16xf32>
    %94 = arith.mulf %93, %90 : vector<8x16xf32>
    %95 = arith.select %92, %90, %94 : vector<8x16xi1>, vector<8x16xf32>
    %c0_41 = arith.constant 0 : index
    %c0_42 = arith.constant 0 : index
    %96 = vector.load %arg13[%c0_41, %c0_42] : memref<1x16xf32, #tpu.memory_space<vmem>>, vector<1x16xf32>
    %c0_43 = arith.constant 0 : index
    %c0_44 = arith.constant 0 : index
    %97 = vector.load %arg12[%c0_43, %c0_44] : memref<48x16xbf16, #tpu.memory_space<vmem>>, vector<48x16xbf16>
    %c1_i32_45 = arith.constant 1 : i32
    %98 = tpu.dynamic_rotate %95 by %c1_i32_45 dim 0 : vector<8x16xf32>, i32 -> vector<8x16xf32>
    %c0_i32_46 = arith.constant 0 : i32
    %99 = vector.broadcast %c0_i32_46 : i32 to vector<8x1xi32>
    %100 = arith.cmpi eq, %42, %99 : vector<8x1xi32>
    %101 = vector.extract_strided_slice %95 {offsets = [1, 0], sizes = [1, 16], strides = [1, 1]} : vector<8x16xf32> to vector<1x16xf32>
    %102 = vector.shape_cast %100 : vector<8x1xi1> to vector<8x1xi1>
    %103 = vector.broadcast %102 : vector<8x1xi1> to vector<8x16xi1>
    %104 = vector.shape_cast %101 : vector<1x16xf32> to vector<1x16xf32>
    %105 = vector.broadcast %104 : vector<1x16xf32> to vector<8x16xf32>
    %106 = arith.select %103, %105, %98 : vector<8x16xi1>, vector<8x16xf32>
    %107 = vector.extract_strided_slice %97 {offsets = [0, 0], sizes = [16, 16], strides = [1, 1]} : vector<48x16xbf16> to vector<16x16xbf16>
    %108 = arith.truncf %106 : vector<8x16xf32> to vector<8x16xbf16>
    %cst_47 = arith.constant dense<0.000000e+00> : vector<8x16xf32>
    %109 = tpu.matmul %108, %107, %cst_47 {dimension_numbers = #tpu.dot_dimension_numbers<[1], [0], [0], [1], [0, 0, 1, 1], [], []>} : vector<8x16xbf16>, vector<16x16xbf16>, vector<8x16xf32> -> vector<8x16xf32>
    %110 = vector.extract_strided_slice %97 {offsets = [16, 0], sizes = [16, 16], strides = [1, 1]} : vector<48x16xbf16> to vector<16x16xbf16>
    %111 = arith.truncf %95 : vector<8x16xf32> to vector<8x16xbf16>
    %cst_48 = arith.constant dense<0.000000e+00> : vector<8x16xf32>
    %112 = tpu.matmul %111, %110, %cst_48 {dimension_numbers = #tpu.dot_dimension_numbers<[1], [0], [0], [1], [0, 0, 1, 1], [], []>} : vector<8x16xbf16>, vector<16x16xbf16>, vector<8x16xf32> -> vector<8x16xf32>
    %113 = arith.addf %109, %112 : vector<8x16xf32>
    %c7_i32_49 = arith.constant 7 : i32
    %114 = tpu.dynamic_rotate %95 by %c7_i32_49 dim 0 : vector<8x16xf32>, i32 -> vector<8x16xf32>
    %c7_i32_50 = arith.constant 7 : i32
    %115 = vector.broadcast %c7_i32_50 : i32 to vector<8x1xi32>
    %116 = arith.cmpi eq, %42, %115 : vector<8x1xi32>
    %117 = vector.extract_strided_slice %95 {offsets = [6, 0], sizes = [1, 16], strides = [1, 1]} : vector<8x16xf32> to vector<1x16xf32>
    %118 = vector.shape_cast %116 : vector<8x1xi1> to vector<8x1xi1>
    %119 = vector.broadcast %118 : vector<8x1xi1> to vector<8x16xi1>
    %120 = vector.shape_cast %117 : vector<1x16xf32> to vector<1x16xf32>
    %121 = vector.broadcast %120 : vector<1x16xf32> to vector<8x16xf32>
    %122 = arith.select %119, %121, %114 : vector<8x16xi1>, vector<8x16xf32>
    %123 = vector.extract_strided_slice %97 {offsets = [32, 0], sizes = [16, 16], strides = [1, 1]} : vector<48x16xbf16> to vector<16x16xbf16>
    %124 = arith.truncf %122 : vector<8x16xf32> to vector<8x16xbf16>
    %cst_51 = arith.constant dense<0.000000e+00> : vector<8x16xf32>
    %125 = tpu.matmul %124, %123, %cst_51 {dimension_numbers = #tpu.dot_dimension_numbers<[1], [0], [0], [1], [0, 0, 1, 1], [], []>} : vector<8x16xbf16>, vector<16x16xbf16>, vector<8x16xf32> -> vector<8x16xf32>
    %126 = arith.addf %113, %125 : vector<8x16xf32>
    %127 = vector.broadcast %96 : vector<1x16xf32> to vector<8x16xf32>
    %128 = arith.addf %126, %127 : vector<8x16xf32>
    %cst_52 = arith.constant 0.000000e+00 : f32
    %129 = vector.broadcast %cst_52 : f32 to vector<8x16xf32>
    %130 = arith.cmpf oge, %128, %129 : vector<8x16xf32>
    %cst_53 = arith.constant 2.000000e-01 : f32
    %131 = vector.broadcast %cst_53 : f32 to vector<8x16xf32>
    %132 = arith.mulf %131, %128 : vector<8x16xf32>
    %133 = arith.select %130, %128, %132 : vector<8x16xi1>, vector<8x16xf32>
    %c0_54 = arith.constant 0 : index
    %c0_55 = arith.constant 0 : index
    %134 = vector.load %arg15[%c0_54, %c0_55] : memref<1x32xf32, #tpu.memory_space<vmem>>, vector<1x32xf32>
    %c0_56 = arith.constant 0 : index
    %c0_57 = arith.constant 0 : index
    %135 = vector.load %arg14[%c0_56, %c0_57] : memref<16x32xbf16, #tpu.memory_space<vmem>>, vector<16x32xbf16>
    %136 = arith.truncf %133 : vector<8x16xf32> to vector<8x16xbf16>
    %cst_58 = arith.constant dense<0.000000e+00> : vector<8x32xf32>
    %137 = tpu.matmul %136, %135, %cst_58 {dimension_numbers = #tpu.dot_dimension_numbers<[1], [0], [0], [1], [0, 0, 1, 1], [], []>} : vector<8x16xbf16>, vector<16x32xbf16>, vector<8x32xf32> -> vector<8x32xf32>
    %138 = vector.broadcast %134 : vector<1x32xf32> to vector<8x32xf32>
    %139 = arith.addf %137, %138 : vector<8x32xf32>
    %140 = arith.addf %84, %139 : vector<8x32xf32>
    %141 = vector.shape_cast %140 : vector<8x32xf32> to vector<8x1x32xf32>
    %142 = vector.shape_cast %141 : vector<8x1x32xf32> to vector<8x1x32xf32>
    %143 = vector.broadcast %142 : vector<8x1x32xf32> to vector<8x2x32xf32>
    %144 = vector.shape_cast %143 : vector<8x2x32xf32> to vector<16x32xf32>
    %c0_59 = arith.constant 0 : index
    %c0_60 = arith.constant 0 : index
    %145 = vector.load %arg17[%c0_59, %c0_60] : memref<1x16xf32, #tpu.memory_space<vmem>>, vector<1x16xf32>
    %c0_61 = arith.constant 0 : index
    %c0_62 = arith.constant 0 : index
    %146 = vector.load %arg16[%c0_61, %c0_62] : memref<96x16xbf16, #tpu.memory_space<vmem>>, vector<96x16xbf16>
    %c1_i32_63 = arith.constant 1 : i32
    %147 = tpu.dynamic_rotate %144 by %c1_i32_63 dim 0 : vector<16x32xf32>, i32 -> vector<16x32xf32>
    %148 = tpu.iota {dimensions = array<i32: 0>} : vector<16x1xi32>
    %c0_i32_64 = arith.constant 0 : i32
    %149 = vector.broadcast %c0_i32_64 : i32 to vector<16x1xi32>
    %150 = arith.cmpi eq, %148, %149 : vector<16x1xi32>
    %151 = vector.extract_strided_slice %144 {offsets = [1, 0], sizes = [1, 32], strides = [1, 1]} : vector<16x32xf32> to vector<1x32xf32>
    %152 = vector.shape_cast %150 : vector<16x1xi1> to vector<16x1xi1>
    %153 = vector.broadcast %152 : vector<16x1xi1> to vector<16x32xi1>
    %154 = vector.shape_cast %151 : vector<1x32xf32> to vector<1x32xf32>
    %155 = vector.broadcast %154 : vector<1x32xf32> to vector<16x32xf32>
    %156 = arith.select %153, %155, %147 : vector<16x32xi1>, vector<16x32xf32>
    %157 = vector.extract_strided_slice %146 {offsets = [0, 0], sizes = [32, 16], strides = [1, 1]} : vector<96x16xbf16> to vector<32x16xbf16>
    %158 = arith.truncf %156 : vector<16x32xf32> to vector<16x32xbf16>
    %cst_65 = arith.constant dense<0.000000e+00> : vector<16x16xf32>
    %159 = tpu.matmul %158, %157, %cst_65 {dimension_numbers = #tpu.dot_dimension_numbers<[1], [0], [0], [1], [0, 0, 1, 1], [], []>} : vector<16x32xbf16>, vector<32x16xbf16>, vector<16x16xf32> -> vector<16x16xf32>
    %160 = vector.extract_strided_slice %146 {offsets = [32, 0], sizes = [32, 16], strides = [1, 1]} : vector<96x16xbf16> to vector<32x16xbf16>
    %161 = arith.truncf %144 : vector<16x32xf32> to vector<16x32xbf16>
    %cst_66 = arith.constant dense<0.000000e+00> : vector<16x16xf32>
    %162 = tpu.matmul %161, %160, %cst_66 {dimension_numbers = #tpu.dot_dimension_numbers<[1], [0], [0], [1], [0, 0, 1, 1], [], []>} : vector<16x32xbf16>, vector<32x16xbf16>, vector<16x16xf32> -> vector<16x16xf32>
    %163 = arith.addf %159, %162 : vector<16x16xf32>
    %c15_i32 = arith.constant 15 : i32
    %164 = tpu.dynamic_rotate %144 by %c15_i32 dim 0 : vector<16x32xf32>, i32 -> vector<16x32xf32>
    %c15_i32_67 = arith.constant 15 : i32
    %165 = vector.broadcast %c15_i32_67 : i32 to vector<16x1xi32>
    %166 = arith.cmpi eq, %148, %165 : vector<16x1xi32>
    %167 = vector.extract_strided_slice %144 {offsets = [14, 0], sizes = [1, 32], strides = [1, 1]} : vector<16x32xf32> to vector<1x32xf32>
    %168 = vector.shape_cast %166 : vector<16x1xi1> to vector<16x1xi1>
    %169 = vector.broadcast %168 : vector<16x1xi1> to vector<16x32xi1>
    %170 = vector.shape_cast %167 : vector<1x32xf32> to vector<1x32xf32>
    %171 = vector.broadcast %170 : vector<1x32xf32> to vector<16x32xf32>
    %172 = arith.select %169, %171, %164 : vector<16x32xi1>, vector<16x32xf32>
    %173 = vector.extract_strided_slice %146 {offsets = [64, 0], sizes = [32, 16], strides = [1, 1]} : vector<96x16xbf16> to vector<32x16xbf16>
    %174 = arith.truncf %172 : vector<16x32xf32> to vector<16x32xbf16>
    %cst_68 = arith.constant dense<0.000000e+00> : vector<16x16xf32>
    %175 = tpu.matmul %174, %173, %cst_68 {dimension_numbers = #tpu.dot_dimension_numbers<[1], [0], [0], [1], [0, 0, 1, 1], [], []>} : vector<16x32xbf16>, vector<32x16xbf16>, vector<16x16xf32> -> vector<16x16xf32>
    %176 = arith.addf %163, %175 : vector<16x16xf32>
    %177 = vector.broadcast %145 : vector<1x16xf32> to vector<16x16xf32>
    %178 = arith.addf %176, %177 : vector<16x16xf32>
    %cst_69 = arith.constant 0.000000e+00 : f32
    %179 = vector.broadcast %cst_69 : f32 to vector<16x16xf32>
    %180 = arith.cmpf oge, %178, %179 : vector<16x16xf32>
    %cst_70 = arith.constant 2.000000e-01 : f32
    %181 = vector.broadcast %cst_70 : f32 to vector<16x16xf32>
    %182 = arith.mulf %181, %178 : vector<16x16xf32>
    %183 = arith.select %180, %178, %182 : vector<16x16xi1>, vector<16x16xf32>
    %184 = vector.shape_cast %183 : vector<16x16xf32> to vector<16x1x16xf32>
    %185 = vector.shape_cast %184 : vector<16x1x16xf32> to vector<16x1x16xf32>
    %186 = vector.broadcast %185 : vector<16x1x16xf32> to vector<16x2x16xf32>
    %187 = vector.shape_cast %186 : vector<16x2x16xf32> to vector<32x16xf32>
    %c0_71 = arith.constant 0 : index
    %c0_72 = arith.constant 0 : index
    %188 = vector.load %arg19[%c0_71, %c0_72] : memref<1x8xf32, #tpu.memory_space<vmem>>, vector<1x8xf32>
    %c0_73 = arith.constant 0 : index
    %c0_74 = arith.constant 0 : index
    %189 = vector.load %arg18[%c0_73, %c0_74] : memref<48x8xbf16, #tpu.memory_space<vmem>>, vector<48x8xbf16>
    %c1_i32_75 = arith.constant 1 : i32
    %190 = tpu.dynamic_rotate %187 by %c1_i32_75 dim 0 : vector<32x16xf32>, i32 -> vector<32x16xf32>
    %191 = tpu.iota {dimensions = array<i32: 0>} : vector<32x1xi32>
    %c0_i32_76 = arith.constant 0 : i32
    %192 = vector.broadcast %c0_i32_76 : i32 to vector<32x1xi32>
    %193 = arith.cmpi eq, %191, %192 : vector<32x1xi32>
    %194 = vector.extract_strided_slice %187 {offsets = [1, 0], sizes = [1, 16], strides = [1, 1]} : vector<32x16xf32> to vector<1x16xf32>
    %195 = vector.shape_cast %193 : vector<32x1xi1> to vector<32x1xi1>
    %196 = vector.broadcast %195 : vector<32x1xi1> to vector<32x16xi1>
    %197 = vector.shape_cast %194 : vector<1x16xf32> to vector<1x16xf32>
    %198 = vector.broadcast %197 : vector<1x16xf32> to vector<32x16xf32>
    %199 = arith.select %196, %198, %190 : vector<32x16xi1>, vector<32x16xf32>
    %200 = vector.extract_strided_slice %189 {offsets = [0, 0], sizes = [16, 8], strides = [1, 1]} : vector<48x8xbf16> to vector<16x8xbf16>
    %201 = arith.truncf %199 : vector<32x16xf32> to vector<32x16xbf16>
    %cst_77 = arith.constant dense<0.000000e+00> : vector<32x8xf32>
    %202 = tpu.matmul %201, %200, %cst_77 {dimension_numbers = #tpu.dot_dimension_numbers<[1], [0], [0], [1], [0, 0, 1, 1], [], []>} : vector<32x16xbf16>, vector<16x8xbf16>, vector<32x8xf32> -> vector<32x8xf32>
    %203 = vector.extract_strided_slice %189 {offsets = [16, 0], sizes = [16, 8], strides = [1, 1]} : vector<48x8xbf16> to vector<16x8xbf16>
    %204 = arith.truncf %187 : vector<32x16xf32> to vector<32x16xbf16>
    %cst_78 = arith.constant dense<0.000000e+00> : vector<32x8xf32>
    %205 = tpu.matmul %204, %203, %cst_78 {dimension_numbers = #tpu.dot_dimension_numbers<[1], [0], [0], [1], [0, 0, 1, 1], [], []>} : vector<32x16xbf16>, vector<16x8xbf16>, vector<32x8xf32> -> vector<32x8xf32>
    %206 = arith.addf %202, %205 : vector<32x8xf32>
    %c31_i32 = arith.constant 31 : i32
    %207 = tpu.dynamic_rotate %187 by %c31_i32 dim 0 : vector<32x16xf32>, i32 -> vector<32x16xf32>
    %c31_i32_79 = arith.constant 31 : i32
    %208 = vector.broadcast %c31_i32_79 : i32 to vector<32x1xi32>
    %209 = arith.cmpi eq, %191, %208 : vector<32x1xi32>
    %210 = vector.extract_strided_slice %187 {offsets = [30, 0], sizes = [1, 16], strides = [1, 1]} : vector<32x16xf32> to vector<1x16xf32>
    %211 = vector.shape_cast %209 : vector<32x1xi1> to vector<32x1xi1>
    %212 = vector.broadcast %211 : vector<32x1xi1> to vector<32x16xi1>
    %213 = vector.shape_cast %210 : vector<1x16xf32> to vector<1x16xf32>
    %214 = vector.broadcast %213 : vector<1x16xf32> to vector<32x16xf32>
    %215 = arith.select %212, %214, %207 : vector<32x16xi1>, vector<32x16xf32>
    %216 = vector.extract_strided_slice %189 {offsets = [32, 0], sizes = [16, 8], strides = [1, 1]} : vector<48x8xbf16> to vector<16x8xbf16>
    %217 = arith.truncf %215 : vector<32x16xf32> to vector<32x16xbf16>
    %cst_80 = arith.constant dense<0.000000e+00> : vector<32x8xf32>
    %218 = tpu.matmul %217, %216, %cst_80 {dimension_numbers = #tpu.dot_dimension_numbers<[1], [0], [0], [1], [0, 0, 1, 1], [], []>} : vector<32x16xbf16>, vector<16x8xbf16>, vector<32x8xf32> -> vector<32x8xf32>
    %219 = arith.addf %206, %218 : vector<32x8xf32>
    %220 = vector.broadcast %188 : vector<1x8xf32> to vector<32x8xf32>
    %221 = arith.addf %219, %220 : vector<32x8xf32>
    %c0_81 = arith.constant 0 : index
    %c0_82 = arith.constant 0 : index
    %c0_83 = arith.constant 0 : index
    %222 = vector.load %arg20[%c0_81, %c0_82, %c0_83] : memref<1x32x8xf32, #tpu.memory_space<vmem>>, vector<1x32x8xf32>
    %223 = vector.shape_cast %222 : vector<1x32x8xf32> to vector<32x8xf32>
    %224 = vector.shape_cast %221 : vector<32x8xf32> to vector<1x32x8xf32>
    tpu.vector_store %arg20[%c0_81, %c0_82, %c0_83], %224 {strides = array<i32>} : memref<1x32x8xf32, #tpu.memory_space<vmem>>, vector<1x32x8xf32>,
    return
  }
  func.func @transform_0(%arg0: i32) -> (i32, i32, i32) {
    %c0_i32 = arith.constant 0 : i32
    %c0_i32_0 = arith.constant 0 : i32
    %c0_i32_1 = arith.constant 0 : i32
    return %arg0, %c0_i32, %c0_i32_0 : i32, i32, i32
  }
  func.func @transform_1(%arg0: i32) -> (i32, i32, i32) {
    %c0_i32 = arith.constant 0 : i32
    %c0_i32_0 = arith.constant 0 : i32
    %c0_i32_1 = arith.constant 0 : i32
    return %arg0, %c0_i32, %c0_i32_0 : i32, i32, i32
  }
  func.func @transform_2(%arg0: i32) -> (i32, i32, i32) {
    %c0_i32 = arith.constant 0 : i32
    %c0_i32_0 = arith.constant 0 : i32
    %c0_i32_1 = arith.constant 0 : i32
    return %arg0, %c0_i32, %c0_i32_0 : i32, i32, i32
  }
  func.func @transform_3(%arg0: i32) -> (i32, i32) {
    %c0_i32 = arith.constant 0 : i32
    %c0_i32_0 = arith.constant 0 : i32
    %c0_i32_1 = arith.constant 0 : i32
    return %c0_i32, %c0_i32_0 : i32, i32
  }
  func.func @transform_4(%arg0: i32) -> (i32, i32) {
    %c0_i32 = arith.constant 0 : i32
    %c0_i32_0 = arith.constant 0 : i32
    %c0_i32_1 = arith.constant 0 : i32
    return %c0_i32, %c0_i32_0 : i32, i32
  }
  func.func @transform_5(%arg0: i32) -> (i32, i32) {
    %c0_i32 = arith.constant 0 : i32
    %c0_i32_0 = arith.constant 0 : i32
    %c0_i32_1 = arith.constant 0 : i32
    return %c0_i32, %c0_i32_0 : i32, i32
  }
  func.func @transform_6(%arg0: i32) -> (i32, i32) {
    %c0_i32 = arith.constant 0 : i32
    %c0_i32_0 = arith.constant 0 : i32
    %c0_i32_1 = arith.constant 0 : i32
    return %c0_i32, %c0_i32_0 : i32, i32
  }
  func.func @transform_7(%arg0: i32) -> (i32, i32) {
    %c0_i32 = arith.constant 0 : i32
    %c0_i32_0 = arith.constant 0 : i32
    %c0_i32_1 = arith.constant 0 : i32
    return %c0_i32, %c0_i32_0 : i32, i32
  }
  func.func @transform_8(%arg0: i32) -> (i32, i32) {
    %c0_i32 = arith.constant 0 : i32
    %c0_i32_0 = arith.constant 0 : i32
    %c0_i32_1 = arith.constant 0 : i32
    return %c0_i32, %c0_i32_0 : i32, i32
  }
  func.func @transform_9(%arg0: i32) -> (i32, i32) {
    %c0_i32 = arith.constant 0 : i32
    %c0_i32_0 = arith.constant 0 : i32
    %c0_i32_1 = arith.constant 0 : i32
    return %c0_i32, %c0_i32_0 : i32, i32
  }
  func.func @transform_10(%arg0: i32) -> (i32, i32) {
    %c0_i32 = arith.constant 0 : i32
    %c0_i32_0 = arith.constant 0 : i32
    %c0_i32_1 = arith.constant 0 : i32
    return %c0_i32, %c0_i32_0 : i32, i32
  }
  func.func @transform_11(%arg0: i32) -> (i32, i32) {
    %c0_i32 = arith.constant 0 : i32
    %c0_i32_0 = arith.constant 0 : i32
    %c0_i32_1 = arith.constant 0 : i32
    return %c0_i32, %c0_i32_0 : i32, i32
  }
  func.func @transform_12(%arg0: i32) -> (i32, i32) {
    %c0_i32 = arith.constant 0 : i32
    %c0_i32_0 = arith.constant 0 : i32
    %c0_i32_1 = arith.constant 0 : i32
    return %c0_i32, %c0_i32_0 : i32, i32
  }
  func.func @transform_13(%arg0: i32) -> (i32, i32) {
    %c0_i32 = arith.constant 0 : i32
    %c0_i32_0 = arith.constant 0 : i32
    %c0_i32_1 = arith.constant 0 : i32
    return %c0_i32, %c0_i32_0 : i32, i32
  }
  func.func @transform_14(%arg0: i32) -> (i32, i32) {
    %c0_i32 = arith.constant 0 : i32
    %c0_i32_0 = arith.constant 0 : i32
    %c0_i32_1 = arith.constant 0 : i32
    return %c0_i32, %c0_i32_0 : i32, i32
  }
  func.func @transform_15(%arg0: i32) -> (i32, i32) {
    %c0_i32 = arith.constant 0 : i32
    %c0_i32_0 = arith.constant 0 : i32
    %c0_i32_1 = arith.constant 0 : i32
    return %c0_i32, %c0_i32_0 : i32, i32
  }
  func.func @transform_16(%arg0: i32) -> (i32, i32) {
    %c0_i32 = arith.constant 0 : i32
    %c0_i32_0 = arith.constant 0 : i32
    %c0_i32_1 = arith.constant 0 : i32
    return %c0_i32, %c0_i32_0 : i32, i32
  }
  func.func @transform_17(%arg0: i32) -> (i32, i32) {
    %c0_i32 = arith.constant 0 : i32
    %c0_i32_0 = arith.constant 0 : i32
    %c0_i32_1 = arith.constant 0 : i32
    return %c0_i32, %c0_i32_0 : i32, i32
  }
  func.func @transform_18(%arg0: i32) -> (i32, i32) {
    %c0_i32 = arith.constant 0 : i32
    %c0_i32_0 = arith.constant 0 : i32
    %c0_i32_1 = arith.constant 0 : i32
    return %c0_i32, %c0_i32_0 : i32, i32
  }
  func.func @transform_19(%arg0: i32) -> (i32, i32, i32) {
    %c0_i32 = arith.constant 0 : i32
    %c0_i32_0 = arith.constant 0 : i32
    %c0_i32_1 = arith.constant 0 : i32
    return %arg0, %c0_i32, %c0_i32_0 : i32, i32, i32
  }
}

</mosaic_0001>

<bundles_post_ra>
// kernel: decoder_forward.1
= control target key start
LH: loop header
LB: loop body
LE: loop exit
PB: predicated region body
PF: predicated region fallthrough
CT: control target
= control target key end

     0   :  { %s2922_s0 = inlined_call_operand.vmem [shape: f32[2,8,32], index: 0, kind: input, shape index: {}]   ;;  %s2923_s1 = inlined_call_operand.vmem [shape: f32[2,1,32], index: 1, kind: input, shape index: {}]   ;;  %s2924_s2 = inlined_call_operand.vmem [shape: f32[2,1,32], index: 2, kind: input, shape index: {}]   ;;  %s2925_s3 = inlined_call_operand.vmem [shape: bf16[32,16], index: 3, kind: input, shape index: {}]   ;;  %s2926_s4 = inlined_call_operand.vmem [shape: f32[1,16], index: 4, kind: input, shape index: {}]   ;;  %s2927_s5 = inlined_call_operand.vmem [shape: bf16[48,16], index: 5, kind: input, shape index: {}]   ;;  %s2928_s6 = inlined_call_operand.vmem [shape: f32[1,16], index: 6, kind: input, shape index: {}]   ;;  %s2929_s7 = inlined_call_operand.vmem [shape: bf16[16,32], index: 7, kind: input, shape index: {}]   ;;  %s2930_s8 = inlined_call_operand.vmem [shape: f32[1,32], index: 8, kind: input, shape index: {}]   ;;  %s2931_s9 = inlined_call_operand.vmem [shape: bf16[32,16], index: 9, kind: input, shape index: {}]   ;;  %s2932_s10 = inlined_call_operand.vmem [shape: f32[1,16], index: 10, kind: input, shape index: {}]   ;;  %s2933_s11 = inlined_call_operand.vmem [shape: bf16[48,16], index: 11, kind: input, shape index: {}]   ;;  %s2934_s12 = inlined_call_operand.vmem [shape: f32[1,16], index: 12, kind: input, shape index: {}]   ;;  %s2935_s13 = inlined_call_operand.vmem [shape: bf16[16,32], index: 13, kind: input, shape index: {}]   ;;  %s2936_s14 = inlined_call_operand.vmem [shape: f32[1,32], index: 14, kind: input, shape index: {}]   ;;  %s2937_s15 = inlined_call_operand.vmem [shape: bf16[96,16], index: 15, kind: input, shape index: {}]   ;;  %s2938_s16 = inlined_call_operand.vmem [shape: f32[1,16], index: 16, kind: input, shape index: {}]   ;;  %s2939_s17 = inlined_call_operand.vmem [shape: bf16[48,8], index: 17, kind: input, shape index: {}]   ;;  %s2940_s18 = inlined_call_operand.vmem [shape: f32[1,8], index: 18, kind: input, shape index: {}]   ;;  %s2941_s19 = inlined_call_operand.vmem [shape: f32[2,32,8], index: 19, kind: output, shape index: {}]  }
   0x1   :  { %2943 = sst [smem:[#allocation2_spill]] %s2922_s0  ;;  %s2586_s0 = smov 0  }
   0x2   :  { %2944 = sst [smem:[#allocation3_spill]] %s2923_s1 }
   0x3   :  { %2945 = sst [smem:[#allocation4_spill]] %s2924_s2 }
   0x4   :  { %2946 = sst [smem:[#allocation5_spill]] %s2925_s3 }
   0x5 LB: > { %s2224_s30 = sadd.s32 4294967295, %s2480_s0   ;;  %p2228_p0 = scmp.ge.s32.totalorder %s2480_s0, 1  ;;  %s2480_s0 = sphi %s2586_s0, %s29_s0  }
   0x6   : > { %p552_p1 = scmp.lt.s32.totalorder %s2480_s0, 3 }
   0x8   : > { %p553_p2 = pnand %p2228_p0, %p552_p1 }
   0x9   : > { %s2947_s1 = sld [smem:[#allocation5_spill]] (!%p553_p2)  ;;  %v2482_v1 = vmov (!%p553_p2), 0.0   ;;  %vm2483_vm0 = vmmov (!%p553_p2), 0   ;;  %p613_p3 = scmp.lt.s32.totalorder (!%p553_p2), %s2224_s30, 1  ;;  %vm630_vm1 = vcmask (!%p553_p2), 261120   ;;  %v2453_v30 = vld [vmem:[%s2927_s5 + $0x8] sm:$0xff] (!%p553_p2)   ;;  %v747_v32 = vlaneseq (!%p553_p2) }
   0xa   : > { %556 = sbr.rel (%p553_p2) target bundleno = 1920 (0x780), region = 96  ;;  %2325 = vmatprep.subr.bf16.mxu1 (!%p553_p2), %v2482_v1  ;;  %2345 = vmatprep.subr.bf16.mxu0 (!%p553_p2), %v2482_v1  ;;  %s2948_s3 = sld [smem:[#allocation2_spill]] (!%p553_p2)  ;;  %v2455_v31 = vld [vmem:[%s2927_s5 + $0x10] sm:$0xff] (!%p553_p2)   ;;  %v2234_v33 = vld [vmem:[%s2926_s4] ss:$0 sm:$0xff] (!%p553_p2)  ;;  %vm765_vm3 = vcmask (!%p553_p2), 130048  }
   0xb   : > { %2329 = vmatprep.mubr.msk.bf16.mxu1 (!%p553_p2), %vm2483_vm0, %v2482_v1  ;;  %2347 = vmatprep.mubr.msk.bf16.mxu0 (!%p553_p2), %vm2483_vm0, %v2482_v1  ;;  %s2949_s29 = sld [smem:[#allocation3_spill]] (!%p553_p2)  ;;  %s2950_s2 = sld [smem:[#allocation4_spill]] (!%p553_p2)  ;;  %v2642_v34 = vshrl.u32 (!%p553_p2), %v747_v32, 7  ;;  %v2454_v44 = vld [vmem:[%s2927_s5] sm:$0xff] (!%p553_p2)   ;;  %vm2146_vm15 = vcmask (!%p553_p2), 64512  }
   0xc   : > { %2346 = vmatpush3.bf16.msra.mxu0 (!%p553_p2), %v2455_v31  ;;  %v2456_v54 = vld [vmem:[%s2929_s7] sm:$0xff] (!%p553_p2)   ;;  %v2461_v31 = vld [vmem:[%s2933_s11 + $0x10] sm:$0xff] (!%p553_p2)  }
   0xd   : > { %2357 = vmatprep.subr.bf16.mxu0 (!%p553_p2), %v2482_v1  ;;  %v754_v40 = vsub.s32 (!%p553_p2), 1, %v2642_v34  ;;  %v864_v41 = vsub.s32 (!%p553_p2), 6, %v2642_v34  ;;  %vm859_vm4 = vcmp.eq.s32.totalorder (!%p553_p2), %v2642_v34, 7  ;;  %vm749_vm5 = vcmp.eq.s32.totalorder (!%p553_p2), %v2642_v34, 0  ;;  %v2457_v55 = vld [vmem:[%s2931_s9] sm:$0xff] (!%p553_p2)  }
   0xe   : > { %vm1431_vm9 = vcmp.lt.s32.totalorder (!%p553_p2), %v2642_v34, 1  ;;  %vm1560_vm10 = vcmp.lt.s32.totalorder (!%p553_p2), %v2642_v34, 7 }
   0xf   : > { %v2451_v0 = vld [vmem:[%s2947_s1] sm:$0xff] (!%p553_p2)   ;;  %v2452_v2 = vld [vmem:[%s2947_s1 + $0x8] sm:$0xff] (!%p553_p2)  }
  0x10   : > { %2326 = vmatpush3.bf16.msra.mxu1 (!%p553_p2), %v2451_v0 }
  0x11   : > { %2327 = vmatprep.subr.bf16.mxu1 %v2482_v1  ;;  %s2952_s30 = smov (!%p613_p3, %s2224_s30), 1 }
  0x12   : > { %s2229_s23 = sshll.u32 %s2952_s30, 3  ;;  %s619_s20 = scalar_lea.vmem %s2949_s29, %s2952_s30 }
  0x13   : > { %s616_s26 = scalar_lea.vmem %s2948_s3, %s2229_s23  ;;  %s622_s23 = scalar_lea.vmem %s2950_s2, %s2952_s30  ;;  %v2232_v24 = vld [vmem:[%s619_s20] ss:$0 sm:$0xff] }
  0x14   : > { %2328 = vmatpush3.bf16.msra.mxu1 %v2452_v2  ;;  %v629_v3 = vld [vmem:[%s616_s26] sm:$0xff]  ;;  %s2284_s27 = sshll.u32 %s2952_s30, 5 }
  0x15   : > { %2333 = vmatprep.subr.bf16.mxu1 %v2482_v1  ;;  %v631_v4 = vsel %vm630_vm1, %v629_v3, 0.0  ;;  %v2233_v26 = vld [vmem:[%s622_s23] ss:$0 sm:$0xff]  ;;  %s627_s22 = scalar_lea.vmem %s2941_s19, %s2284_s27 }
  0x16   : > { %v632_v5 = vrot.slane %v631_v4, 4 }
  0x18   : > { %v633_v6 = vadd.f32 %v632_v5, %v631_v4  ;;  %v2244_v4 = vld [vmem:[%s2928_s6] ss:$0 sm:$0xff] }
  0x1a   : > { %v634_v7 = vrot.slane %v633_v6, 2 }
  0x1c   : > { %v635_v8 = vadd.f32 %v634_v7, %v633_v6 }
  0x1e   : > { %v636_v9 = vrot.slane %v635_v8, 1 }
  0x20   : > { %v637_v10 = vadd.f32 %v636_v9, %v635_v8 }
  0x22   : > { %v639_v11 = vmul.f32 0.125, %v637_v10 }
  0x24   : > { %v640_v12 = vsub.f32 %v629_v3, %v639_v11 }
  0x26   : > { %v641_v13 = vmul.f32 %v640_v12, %v640_v12 }
  0x28   : > { %v642_v14 = vsel %vm630_vm1, %v641_v13, 0.0  ;;  %v2245_v13 = vld [vmem:[%s2930_s8] ss:$0 sm:$0xff] }
  0x29   : > { %v643_v15 = vrot.slane %v642_v14, 4 }
  0x2b   : > { %v644_v16 = vadd.f32 %v643_v15, %v642_v14 }
  0x2d   : > { %v645_v17 = vrot.slane %v644_v16, 2 }
  0x2f   : > { %v646_v18 = vadd.f32 %v645_v17, %v644_v16 }
  0x31   : > { %v647_v19 = vrot.slane %v646_v18, 1 }
  0x33   : > { %v648_v20 = vadd.f32 %v647_v19, %v646_v18 }
  0x35   : > { %v649_v21 = vmul.f32 0.125, %v648_v20 }
  0x37   : > { %v650_v22 = vadd.f32 1e-05, %v649_v21  ;;  %v2459_v21 = vld [vmem:[%s2933_s11 + $0x8] sm:$0xff]  }
  0x39   : > { %2472 = vrsqrt.f32 %v650_v22  ;;  %v2460_v22 = vld [vmem:[%s2933_s11] sm:$0xff]  }
  0x43   : > { %v2473_v23 = vpop.eup %2472 }
  0x44   : > { %v652_v25 = vmul.f32 %v2473_v23, %v640_v12  ;;  %v2458_v12 = vld [vmem:[%s2931_s9 + $0x8] sm:$0xff]   ;;  %v2248_v23 = vld [vmem:[%s2932_s10] ss:$0 sm:$0xff] }
  0x46   : > { %v660_v27 = vmul.f32 %v2232_v24, %v652_v25 }
  0x48   : > { %v2624_v28 = vadd.f32 %v2233_v26, %v660_v27 }
  0x4a   : > { %v674_v29 = vpack.c.bf16 %v2624_v28, %v2624_v28 }
  0x4c   : > { %2330 = vmatmul.mubr.msk.bf16.vlgmr.msra.gmra.mrb[0].mxu1 %vm630_vm1, %v674_v29 }
  0x4d   : > { %2335 = vmatprep.mubr.msk.bf16.mxu1 %vm2483_vm0, %v2482_v1  ;;  %2334 = vmatpush3.bf16.msra.mxu1 %v2453_v30 }
  0x4e   : > { %2339 = vmatprep.subr.bf16.mxu1 %v2482_v1 }
 0x11f   : > { %v730_v35 = vpop.f32.mrb[0].mxu1 }
 0x120   : > { %v731_v36 = vadd.f32 %v2234_v33, %v730_v35  ;;  %v2331_v37 = vpop.f32.mrb[1].mxu1 }
 0x121   : > { %v733_v38 = vpop.f32.mrb[2].mxu1 }
 0x122   : > { %vm736_vm2 = vcmp.ge.f32.partialorder %v731_v36, 0.0  ;;  %v737_v39 = vmul.f32 0.2, %v731_v36  ;;  %v2332_v42 = vpop.f32.mrb[3].mxu1 }
 0x123   : > { %v2462_v42 = vld [vmem:[%s2935_s13] sm:$0xff]  }
 0x124   : > { %v738_v43 = vsel %vm736_vm2, %v731_v36, %v737_v39 }
 0x125   : > { %v758_v45 = vpack.c.bf16 %v738_v43, %v738_v43  ;;  %v858_v46 = vrot.slane %v738_v43, 1  ;;  %v746_v47 = vrot.slane %v738_v43, 7  ;;  %v755_v48 = vrot.slane %v738_v43, %v754_v40 }
 0x126   : > { %v865_v49 = vrot.slane %v738_v43, %v864_v41 }
 0x127   : > { %2336 = vmatmul.mubr.msk.bf16.vlgmr.msra.gmra.mrb[4].mxu1 %vm765_vm3, %v758_v45  ;;  %v756_v52 = vsel %vm749_vm5, %v755_v48, %v746_v47 }
 0x128   : > { %2340 = vmatpush3.bf16.msra.mxu1 %v2454_v44  ;;  %v866_v50 = vsel %vm859_vm4, %v865_v49, %v858_v46  ;;  %2341 = vmatprep.mubr.msk.bf16.mxu1 %vm2483_vm0, %v2482_v1  ;;  %v757_v53 = vpack.c.bf16 %v756_v52, %v756_v52  ;;  %v2258_v52 = vld [vmem:[%s2934_s12] ss:$0 sm:$0xff] }
 0x129   : > { %v867_v51 = vpack.c.bf16 %v866_v50, %v866_v50  ;;  %2351 = vmatprep.subr.bf16.mxu1 %v2482_v1 }
 0x12b   : > { %2348 = vmatmul.mubr.msk.bf16.vlgmr.msra.gmra.mrb[0].mxu0 %vm765_vm3, %v867_v51 }
 0x12c   : > { %2361 = vmatprep.mubr.msk.bf16.mxu0 %vm2483_vm0, %v2482_v1  ;;  %2358 = vmatpush3.bf16.msra.mxu0 %v2457_v55 }
 0x12d   : > { %2359 = vmatprep.subr.bf16.mxu0 %v2482_v1 }
 0x12f   : > { %2342 = vmatmul.mubr.msk.bf16.vlgmr.msra.gmra.mrb[8].mxu1 %vm765_vm3, %v757_v53 }
 0x130   : > { %2353 = vmatprep.mubr.msk.bf16.mxu1 %vm2483_vm0, %v2482_v1  ;;  %2352 = vmatpush3.bf16.msra.mxu1 %v2456_v54 }
 0x131   : > { %2365 = vmatprep.subr.bf16.mxu1 %v2482_v1  ;;  %2360 = vmatpush3.bf16.msra.mxu0 %v2458_v12 }
 0x132   : > { %2371 = vmatprep.subr.bf16.mxu0 %v2482_v1 }
 0x1fa   : > { %v803_v56 = vpop.f32.mrb[4].mxu1 }
 0x1fb   : > { %v2337_v57 = vpop.f32.mrb[5].mxu1 }
 0x1fc   : > { %v806_v58 = vpop.f32.mrb[6].mxu1 }
 0x1fd   : > { %v2338_v59 = vpop.f32.mrb[7].mxu1 }
 0x1fe   : > { %v911_v60 = vpop.f32.mrb[0].mxu0 }
 0x1ff   : > { %v2349_v61 = vpop.f32.mrb[1].mxu0 }
 0x200   : > { %v914_v62 = vpop.f32.mrb[2].mxu0 }
 0x201   : > { %v2350_v63 = vpop.f32.mrb[3].mxu0  ;;  %v2463_v62 = vld [vmem:[%s2937_s15 + $0x10] sm:$0xff]  }
 0x202   : > { %v852_v0 = vpop.f32.mrb[8].mxu1  ;;  %v2465_v63 = vld [vmem:[%s2937_s15] sm:$0xff]  }
 0x203   : > { %v853_v2 = vadd.f32 %v852_v0, %v803_v56  ;;  %v2343_v3 = vpop.f32.mrb[9].mxu1  ;;  %v2464_v0 = vld [vmem:[%s2937_s15 + $0x18] sm:$0xff]  }
 0x204   : > { %v855_v5 = vpop.f32.mrb[10].mxu1  ;;  %v2484_v3 = vmov 1966171168  }
 0x205   : > { %v917_v6 = vadd.f32 %v911_v60, %v853_v2  ;;  %v2344_v7 = vpop.f32.mrb[11].mxu1  ;;  %v2467_v2 = vld [vmem:[%s2937_s15 + $0x8] sm:$0xff]  }
 0x207   : > { %v924_v8 = vadd.f32 %v2244_v4, %v917_v6  ;;  %v1301_v4 = vunpack.c.l.s4 %v2484_v3  ;;  %v2259_v6 = vld [vmem:[%s2936_s14] ss:$0 sm:$0xff] }
 0x209   : > { %vm925_vm6 = vcmp.ge.f32.partialorder %v924_v8, 0.0  ;;  %v926_v9 = vmul.f32 0.2, %v924_v8  ;;  %v1302_v5 = vunpack.c.0.s8 %v1301_v4 }
 0x20b   : > { %v927_v10 = vsel %vm925_vm6, %v924_v8, %v926_v9  ;;  %v2759_v8 = vsub.s32 %v1302_v5, %v2642_v34 }
 0x20c   : > { %v931_v11 = vpack.c.bf16 %v927_v10, %v927_v10 }
 0x20e   : > { %2354 = vmatmul.mubr.msk.bf16.vlgmr.msra.gmra.mrb[12].mxu1 %vm765_vm3, %v931_v11 }
 0x20f   : > { %2367 = vmatprep.mubr.msk.bf16.mxu1 %vm2483_vm0, %v2482_v1  ;;  %2366 = vmatpush3.bf16.msra.mxu1 %v2459_v21 }
 0x210   : > { %2377 = vmatprep.subr.bf16.mxu1 %v2482_v1 }
 0x2e1   : > { %v981_v14 = vpop.f32.mrb[12].mxu1 }
 0x2e2   : > { %v982_v15 = vadd.f32 %v2245_v13, %v981_v14  ;;  %v2355_v16 = vpop.f32.mrb[13].mxu1  ;;  %v2485_v14 = vmov 1983009808  }
 0x2e3   : > { %v984_v17 = vpop.f32.mrb[14].mxu1 }
 0x2e4   : > { %v2691_v18 = vadd.f32 %v982_v15, %v2624_v28  ;;  %v2356_v19 = vpop.f32.mrb[15].mxu1  ;;  %v1396_v15 = vunpack.c.l.s4 %v2485_v14 }
 0x2e6   : > { %v993_v20 = vpack.c.bf16 %v2691_v18, %v2691_v18 }
 0x2e8   : > { %2362 = vmatmul.mubr.msk.bf16.vlgmr.msra.gmra.mrb[4].mxu0 %vm630_vm1, %v993_v20 }
 0x2e9   : > { %2373 = vmatprep.mubr.msk.bf16.mxu0 %vm2483_vm0, %v2482_v1  ;;  %2372 = vmatpush3.bf16.msra.mxu0 %v2460_v22  ;;  %v2766_v22 = vsub.s32 0, %v2642_v34 }
 0x2ea   : > { %2383 = vmatprep.subr.bf16.mxu0 %v2482_v1 }
 0x3bb   : > { %v1049_v24 = vpop.f32.mrb[4].mxu0 }
 0x3bc   : > { %v1050_v25 = vadd.f32 %v2248_v23, %v1049_v24  ;;  %v2363_v26 = vpop.f32.mrb[5].mxu0  ;;  %v1397_v23 = vunpack.c.0.s8 %v1396_v15 }
 0x3bd   : > { %v1052_v27 = vpop.f32.mrb[6].mxu0 }
 0x3be   : > { %vm1055_vm7 = vcmp.ge.f32.partialorder %v1050_v25, 0.0  ;;  %v1056_v28 = vmul.f32 0.2, %v1050_v25  ;;  %v2364_v29 = vpop.f32.mrb[7].mxu0 }
 0x3c0   : > { %v1057_v30 = vsel %vm1055_vm7, %v1050_v25, %v1056_v28 }
 0x3c1   : > { %v1065_v32 = vrot.slane %v1057_v30, 7  ;;  %v1069_v33 = vrot.slane %v1057_v30, %v754_v40  ;;  %v1072_v35 = vpack.c.bf16 %v1057_v30, %v1057_v30  ;;  %v1171_v36 = vrot.slane %v1057_v30, 1 }
 0x3c2   : > { %v1175_v37 = vrot.slane %v1057_v30, %v864_v41 }
 0x3c3   : > { %2368 = vmatmul.mubr.msk.bf16.vlgmr.msra.gmra.mrb[16].mxu1 %vm765_vm3, %v1072_v35  ;;  %v1070_v38 = vsel %vm749_vm5, %v1069_v33, %v1065_v32  ;;  %v2775_v33 = vsub.s32 %v1397_v23, %v2642_v34 }
 0x3c4   : > { %2378 = vmatpush3.bf16.msra.mxu1 %v2461_v31  ;;  %v1071_v39 = vpack.c.bf16 %v1070_v38, %v1070_v38  ;;  %2379 = vmatprep.mubr.msk.bf16.mxu1 %vm2483_vm0, %v2482_v1  ;;  %v1176_v40 = vsel %vm859_vm4, %v1175_v37, %v1171_v36 }
 0x3c5   : > { %2389 = vmatprep.subr.bf16.mxu1 %v2482_v1  ;;  %v1177_v41 = vpack.c.bf16 %v1176_v40, %v1176_v40 }
 0x3c6   : > { %2374 = vmatmul.mubr.msk.bf16.vlgmr.msra.gmra.mrb[8].mxu0 %vm765_vm3, %v1071_v39 }
 0x3c7   : > { %2385 = vmatprep.mubr.msk.bf16.mxu0 %vm2483_vm0, %v2482_v1  ;;  %2384 = vmatpush3.bf16.msra.mxu0 %v2462_v42 }
 0x3c8   : > { %2397 = vmatprep.subr.bf16.mxu0 %v2482_v1 }
 0x3cb   : > { %2380 = vmatmul.mubr.msk.bf16.vlgmr.msra.gmra.mrb[20].mxu1 %vm765_vm3, %v1177_v41 }
 0x3cc   : > { %2393 = vmatprep.mubr.msk.bf16.mxu1 %vm2483_vm0, %v2482_v1  ;;  %2390 = vmatpush3.bf16.msra.mxu1 %v2463_v62 }
 0x3cd   : > { %2391 = vmatprep.subr.bf16.mxu1 %v2482_v1 }
 0x3d0   : > { %2392 = vmatpush3.bf16.msra.mxu1 %v2464_v0 }
 0x3d1   : > { %2405 = vmatprep.subr.bf16.mxu1 %v2482_v1 }
 0x496   : > { %v1116_v43 = vpop.f32.mrb[16].mxu1 }
 0x497   : > { %v2369_v44 = vpop.f32.mrb[17].mxu1 }
 0x498   : > { %v1119_v45 = vpop.f32.mrb[18].mxu1 }
 0x499   : > { %v2370_v46 = vpop.f32.mrb[19].mxu1  ;;  %v1165_v47 = vpop.f32.mrb[8].mxu0 }
 0x49a   : > { %v1166_v48 = vadd.f32 %v1165_v47, %v1116_v43  ;;  %v2375_v49 = vpop.f32.mrb[9].mxu0 }
 0x49b   : > { %v1168_v50 = vpop.f32.mrb[10].mxu0 }
 0x49c   : > { %v2376_v51 = vpop.f32.mrb[11].mxu0 }
 0x49d   : > { %v1434_v51 = vadd.s32 8, %v2642_v34 }
 0x49e   : > { %v1221_v53 = vpop.f32.mrb[20].mxu1 }
 0x49f   : > { %v1227_v54 = vadd.f32 %v1221_v53, %v1166_v48  ;;  %v2381_v55 = vpop.f32.mrb[21].mxu1  ;;  %v2466_v53 = vld [vmem:[%s2937_s15 + $0x20] sm:$0xff]   ;;  %vm1564_vm11 = vcmp.eq.s32.totalorder %v1434_v51, 15 }
 0x4a0   : > { %v1224_v56 = vpop.f32.mrb[22].mxu1 }
 0x4a1   : > { %v1234_v57 = vadd.f32 %v2258_v52, %v1227_v54  ;;  %v2382_v58 = vpop.f32.mrb[23].mxu1  ;;  %v1571_v52 = vsub.s32 7, %v2642_v34 }
 0x4a3   : > { %vm1235_vm8 = vcmp.ge.f32.partialorder %v1234_v57, 0.0  ;;  %v1236_v59 = vmul.f32 0.2, %v1234_v57 }
 0x4a5   : > { %v1237_v60 = vsel %vm1235_vm8, %v1234_v57, %v1236_v59 }
 0x4a6   : > { %v1241_v61 = vpack.c.bf16 %v1237_v60, %v1237_v60 }
 0x4a8   : > { %2386 = vmatmul.mubr.msk.bf16.vlgmr.msra.gmra.mrb[12].mxu0 %vm765_vm3, %v1241_v61 }
 0x4a9   : > { %2401 = vmatprep.mubr.msk.bf16.mxu0 %vm2483_vm0, %v2482_v1  ;;  %2398 = vmatpush3.bf16.msra.mxu0 %v2465_v63 }
 0x4aa   : > { %2399 = vmatprep.subr.bf16.mxu0 %v2482_v1 }
 0x4ad   : > { %2400 = vmatpush3.bf16.msra.mxu0 %v2467_v2  ;;  %v2468_v2 = vld [vmem:[%s2937_s15 + $0x28] sm:$0xff]  }
 0x57b   : > { %v1291_v7 = vpop.f32.mrb[12].mxu0 }
 0x57c   : > { %v1292_v9 = vadd.f32 %v2259_v6, %v1291_v7  ;;  %v2387_v10 = vpop.f32.mrb[13].mxu0  ;;  %v2469_v7 = vld [vmem:[%s2939_s17 + $0x8] sm:$0xff]  }
 0x57d   : > { %v1294_v11 = vpop.f32.mrb[14].mxu0  ;;  %2413 = vmatprep.subr.bf16.mxu0 %v2469_v7 }
 0x57e   : > { %v1297_v12 = vadd.f32 %v1292_v9, %v2691_v18  ;;  %v2388_v13 = vpop.f32.mrb[15].mxu0 }
 0x580   : > { %v1299_v16 = vcombine.high %v1297_v12, %v1297_v12  ;;  %v1306_v17 = vrot.slane %v1297_v12, %v2759_v8  ;;  %v1441_v59 = vrot.slane %v1297_v12, %v2766_v22  ;;  %v1572_v63 = vrot.slane %v1297_v12, %v1571_v52 }
 0x582   : > { %v1313_v19 = vrot.slane %v1299_v16, %v2759_v8  ;;  %v1314_v20 = vcombine.high %v1306_v17, %v1306_v17  ;;  %v1322_v21 = vrot.slane %v1306_v17, %v2759_v8 }
 0x584   : > { %v1315_v24 = vcombine.high %v1313_v19, %v1313_v19  ;;  %v1329_v25 = vrot.slane %v1313_v19, %v2759_v8  ;;  %v1336_v18 = vrot.slane %v1314_v20, %v2759_v8  ;;  %v1344_v26 = vcombine.high %v1322_v21, %v1322_v21  ;;  %v2271_v20 = vld [vmem:[%s2938_s16] ss:$0 sm:$0xff] }
 0x585   : > { %v1351_v31 = vrot.slane %v1322_v21, %v2766_v22 }
 0x586   : > { %v1343_v27 = vrot.slane %v1315_v24, %v2759_v8  ;;  %v1345_v28 = vcombine.high %v1329_v25, %v1329_v25  ;;  %v1346_v29 = vcombine.high %v1336_v18, %v1336_v18  ;;  %v1355_v30 = vrot.slane %v1336_v18, %v2766_v22 }
 0x587   : > { %v1359_v32 = vrot.slane %v1344_v26, %v2766_v22  ;;  %v1367_v37 = vrot.slane %v1329_v25, %v2766_v22 }
 0x588   : > { %v1347_v35 = vcombine.high %v1343_v27, %v1343_v27  ;;  %v1363_v36 = vrot.slane %v1346_v29, %v2766_v22  ;;  %v1371_v38 = vrot.slane %v1343_v27, %v2766_v22  ;;  %v1393_v39 = vcombine.low %v1351_v31, %v1355_v30 }
 0x589   : > { %v1375_v40 = vrot.slane %v1345_v28, %v2766_v22 }
 0x58a   : > { %v1379_v41 = vrot.slane %v1347_v35, %v2766_v22  ;;  %v1394_v42 = vcombine.low %v1359_v32, %v1363_v36  ;;  %v1410_v43 = vcombine.low %v1367_v37, %v1371_v38  ;;  %v1401_v44 = vrot.slane %v1393_v39, %v2775_v33 }
 0x58c   : > { %v1408_v45 = vrot.slane %v1394_v42, %v2775_v33  ;;  %v1411_v46 = vcombine.low %v1375_v40, %v1379_v41  ;;  %v1418_v48 = vrot.slane %v1410_v43, %v2775_v33 }
 0x58e   : > { %v1409_v47 = vcombine.low %v1401_v44, %v1408_v45  ;;  %v1425_v49 = vrot.slane %v1411_v46, %v2775_v33 }
 0x590   : > { %v1426_v50 = vcombine.low %v1418_v48, %v1425_v49  ;;  %v1429_v54 = vrot.slane %v1409_v47, 7  ;;  %v1558_v57 = vrot.slane %v1409_v47, 1  ;;  %v2846_v49 = vadd.s32 24, %v2642_v34 }
 0x592   : > { %v1445_v55 = vpack.c.bf16 %v1426_v50, %v1409_v47  ;;  %v1430_v56 = vrot.slane %v1426_v50, 7  ;;  %v1559_v58 = vrot.slane %v1426_v50, 1  ;;  %vm2052_vm14 = vcmp.eq.s32.totalorder %v2846_v49, 31 }
 0x594   : > { %2394 = vmatmul.mubr.msk.bf16.vlgmr.msra.gmra.mrb[24].mxu1 %vm630_vm1, %v1445_v55  ;;  %v1432_v60 = vsel %vm1431_vm9, %v1429_v54, %v1430_v56  ;;  %v1433_v61 = vsel %vm1431_vm9, %v1430_v56, %v1429_v54  ;;  %v1562_v62 = vsel %vm1560_vm10, %v1559_v58, %v1558_v57  ;;  %v1561_v4 = vsel %vm1560_vm10, %v1558_v57, %v1559_v58 }
 0x595   : > { %2406 = vmatpush3.bf16.msra.mxu1 %v2466_v53  ;;  %v1442_v0 = vsel %vm749_vm5, %v1441_v59, %v1433_v61  ;;  %2409 = vmatprep.mubr.msk.bf16.mxu1 %vm2483_vm0, %v2482_v1  ;;  %v1574_v5 = vsel %vm1564_vm11, %v1572_v63, %v1562_v62 }
 0x596   : > { %2407 = vmatprep.subr.bf16.mxu1 %v2482_v1  ;;  %v1444_v3 = vpack.c.bf16 %v1432_v60, %v1442_v0  ;;  %v1575_v6 = vpack.c.bf16 %v1574_v5, %v1561_v4  ;;  %v2821_v1 = vld [vmem:[%s2939_s17] sm:$0xff]  }
 0x598   : > { %2402 = vmatmul.mubr.msk.bf16.vlgmr.msra.gmra.mrb[16].mxu0 %vm630_vm1, %v1444_v3 }
 0x599   : > { %2408 = vmatpush3.bf16.msra.mxu1 %v2468_v2  ;;  %2414 = vmatpush3.bf16.msra.mxu0 %v2469_v7 }
 0x59a   : > { %2419 = vmatprep.subr.bf16.mxu0 %v2821_v1 }
 0x59c   : > { %2410 = vmatmul.mubr.msk.bf16.vlgmr.msra.gmra.mrb[28].mxu1 %vm630_vm1, %v1575_v6 }
 0x667   : > { %v1495_v9 = vpop.f32.mrb[24].mxu1 }
 0x668   : > { %v2395_v10 = vpop.f32.mrb[25].mxu1 }
 0x669   : > { %v1498_v11 = vpop.f32.mrb[26].mxu1 }
 0x66a   : > { %v2396_v12 = vpop.f32.mrb[27].mxu1 }
 0x66b   : > { %v1551_v13 = vpop.f32.mrb[16].mxu0 }
 0x66c   : > { %v1552_v14 = vadd.f32 %v1551_v13, %v1495_v9  ;;  %v2403_v15 = vpop.f32.mrb[17].mxu0 }
 0x66d   : > { %v1554_v16 = vpop.f32.mrb[18].mxu0 }
 0x66e   : > { %v1555_v17 = vadd.f32 %v1554_v16, %v1498_v11  ;;  %v2404_v19 = vpop.f32.mrb[19].mxu0 }
 0x66f   : > { %v1625_v21 = vpop.f32.mrb[28].mxu1 }
 0x670   : > { %v1632_v23 = vadd.f32 %v1625_v21, %v1552_v14  ;;  %v2411_v24 = vpop.f32.mrb[29].mxu1 }
 0x671   : > { %v1628_v25 = vpop.f32.mrb[30].mxu1 }
 0x672   : > { %v1640_v18 = vadd.f32 %v2271_v20, %v1632_v23  ;;  %v1633_v26 = vadd.f32 %v1628_v25, %v1555_v17  ;;  %v2412_v27 = vpop.f32.mrb[31].mxu1 }
 0x674   : > { %vm1642_vm12 = vcmp.ge.f32.partialorder %v1640_v18, 0.0  ;;  %v1644_v28 = vmul.f32 0.2, %v1640_v18  ;;  %v1641_v29 = vadd.f32 %v2271_v20, %v1633_v26 }
 0x676   : > { %v2827_v30 = vsel %vm1642_vm12, %v1640_v18, %v1644_v28  ;;  %vm1643_vm13 = vcmp.ge.f32.partialorder %v1641_v29, 0.0  ;;  %v1645_v31 = vmul.f32 0.2, %v1641_v29 }
 0x677   : > { %v1650_v32 = vcombine.high %v2827_v30, %v2827_v30  ;;  %v1657_v35 = vrot.slane %v2827_v30, %v2759_v8 }
 0x678   : > { %v2833_v36 = vsel %vm1643_vm13, %v1641_v29, %v1645_v31 }
 0x679   : > { %v1664_v37 = vrot.slane %v1650_v32, %v2759_v8  ;;  %v1665_v38 = vcombine.high %v1657_v35, %v1657_v35  ;;  %v1673_v39 = vrot.slane %v1657_v35, %v2759_v8  ;;  %v1699_v40 = vcombine.high %v2833_v36, %v2833_v36 }
 0x67a   : > { %v1706_v41 = vrot.slane %v2833_v36, %v2759_v8 }
 0x67b   : > { %v1666_v42 = vcombine.high %v1664_v37, %v1664_v37  ;;  %v1680_v43 = vrot.slane %v1664_v37, %v2759_v8  ;;  %v1687_v44 = vrot.slane %v1665_v38, %v2759_v8  ;;  %v1695_v45 = vcombine.high %v1673_v39, %v1673_v39 }
 0x67c   : > { %v1713_v46 = vrot.slane %v1699_v40, %v2759_v8  ;;  %v1714_v47 = vcombine.high %v1706_v41, %v1706_v41  ;;  %v1722_v48 = vrot.slane %v1706_v41, %v2759_v8  ;;  %v1751_v55 = vrot.slane %v1673_v39, %v2766_v22 }
 0x67d   : > { %v1694_v50 = vrot.slane %v1666_v42, %v2759_v8  ;;  %v1696_v51 = vcombine.high %v1680_v43, %v1680_v43  ;;  %v1697_v53 = vcombine.high %v1687_v44, %v1687_v44  ;;  %v1755_v54 = vrot.slane %v1687_v44, %v2766_v22 }
 0x67e   : > { %v1759_v56 = vrot.slane %v1695_v45, %v2766_v22  ;;  %v1715_v57 = vcombine.high %v1713_v46, %v1713_v46  ;;  %v1729_v58 = vrot.slane %v1713_v46, %v2759_v8  ;;  %v1767_v61 = vrot.slane %v1680_v43, %v2766_v22 }
 0x67f   : > { %v1698_v59 = vcombine.high %v1694_v50, %v1694_v50  ;;  %v1763_v60 = vrot.slane %v1697_v53, %v2766_v22  ;;  %v1771_v62 = vrot.slane %v1694_v50, %v2766_v22  ;;  %v1775_v63 = vrot.slane %v1696_v51, %v2766_v22  ;;  %v2471_v50 = vld [vmem:[%s2939_s17 + $0x10] sm:$0xff]  }
 0x680   : > { %v1736_v0 = vrot.slane %v1714_v47, %v2759_v8  ;;  %v1743_v2 = vrot.slane %v1715_v57, %v2759_v8  ;;  %v1744_v3 = vcombine.high %v1722_v48, %v1722_v48  ;;  %v1819_v4 = vcombine.low %v1751_v55, %v1755_v54 }
 0x681   : > { %v1745_v5 = vcombine.high %v1729_v58, %v1729_v58  ;;  %v1783_v6 = vrot.slane %v1722_v48, %v2766_v22  ;;  %v1779_v7 = vrot.slane %v1698_v59, %v2766_v22  ;;  %v1799_v12 = vrot.slane %v1729_v58, %v2766_v22 }
 0x682   : > { %v1746_v9 = vcombine.high %v1736_v0, %v1736_v0  ;;  %v1747_v10 = vcombine.high %v1743_v2, %v1743_v2  ;;  %v1787_v11 = vrot.slane %v1736_v0, %v2766_v22  ;;  %v1791_v13 = vrot.slane %v1744_v3, %v2766_v22 }
 0x683   : > { %v1803_v14 = vrot.slane %v1743_v2, %v2766_v22  ;;  %v1807_v15 = vrot.slane %v1745_v5, %v2766_v22  ;;  %v1820_v8 = vcombine.low %v1759_v56, %v1763_v60  ;;  %v1836_v20 = vcombine.low %v1767_v61, %v1771_v62 }
 0x684   : > { %v1795_v16 = vrot.slane %v1746_v9, %v2766_v22  ;;  %v1811_v17 = vrot.slane %v1747_v10, %v2766_v22  ;;  %v1853_v19 = vcombine.low %v1783_v6, %v1787_v11  ;;  %v1827_v23 = vrot.slane %v1819_v4, %v2775_v33 }
 0x685   : > { %v1870_v21 = vcombine.low %v1799_v12, %v1803_v14  ;;  %v1834_v24 = vrot.slane %v1820_v8, %v2775_v33  ;;  %v1837_v25 = vcombine.low %v1775_v63, %v1779_v7  ;;  %v1844_v28 = vrot.slane %v1836_v20, %v2775_v33 }
 0x686   : > { %v1854_v18 = vcombine.low %v1791_v13, %v1795_v16  ;;  %v1871_v26 = vcombine.low %v1807_v15, %v1811_v17  ;;  %v1861_v31 = vrot.slane %v1853_v19, %v2775_v33  ;;  %v1910_v39 = vrot.slane %v2827_v30, %v2766_v22 }
 0x687   : > { %v1835_v27 = vcombine.low %v1827_v23, %v1834_v24  ;;  %v1851_v29 = vrot.slane %v1837_v25, %v2775_v33  ;;  %v1878_v35 = vrot.slane %v1870_v21, %v2775_v33  ;;  %v2064_v53 = vrot.slane %v2833_v36, %v1571_v52 }
 0x688   : > { %v1868_v32 = vrot.slane %v1854_v18, %v2775_v33  ;;  %v1885_v37 = vrot.slane %v1871_v26, %v2775_v33 }
 0x689   : > { %v1852_v38 = vcombine.low %v1844_v28, %v1851_v29  ;;  %v1891_v42 = vrot.slane %v1835_v27, 7  ;;  %v2041_v45 = vrot.slane %v1835_v27, 1 }
 0x68a   : > { %v1869_v40 = vcombine.low %v1861_v31, %v1868_v32  ;;  %v1886_v41 = vcombine.low %v1878_v35, %v1885_v37 }
 0x68b   : > { %v1917_v43 = vpack.c.bf16 %v1852_v38, %v1835_v27  ;;  %v1892_v44 = vrot.slane %v1852_v38, 7  ;;  %v2042_v46 = vrot.slane %v1852_v38, 1 }
 0x68c   : > { %v1918_v47 = vpack.c.bf16 %v1886_v41, %v1869_v40  ;;  %v1894_v48 = vrot.slane %v1886_v41, 7  ;;  %v1893_v33 = vrot.slane %v1869_v40, 7  ;;  %v2043_v51 = vrot.slane %v1869_v40, 1 }
 0x68d   : > { %2415 = vmatprep.mubr.msk.bf16.mxu0 %vm765_vm3, %v1917_v43  ;;  %v1897_v22 = vsel %vm1431_vm9, %v1891_v42, %v1892_v44  ;;  %v2047_v30 = vsel %vm1560_vm10, %v2041_v45, %v2042_v46  ;;  %v2044_v54 = vrot.slane %v1886_v41, 1 }
 0x68e   : > { %2416 = vmatmul.mubr.msk.bf16.vlgmr.msra.gmra.mrb[20].mxu0 %vm765_vm3, %v1918_v47  ;;  %v1898_v55 = vsel %vm1431_vm9, %v1894_v48, %v1891_v42  ;;  %v1895_v56 = vsel %vm1431_vm9, %v1893_v33, %v1894_v48  ;;  %v1896_v52 = vsel %vm1431_vm9, %v1892_v44, %v1893_v33  ;;  %v2046_v36 = vsel %vm1560_vm10, %v2042_v46, %v2043_v51 }
 0x68f   : > { %2420 = vmatpush3.bf16.msra.mxu0 %v2821_v1  ;;  %v1911_v57 = vsel %vm749_vm5, %v1910_v39, %v1898_v55  ;;  %v1916_v58 = vpack.c.bf16 %v1895_v56, %v1896_v52  ;;  %v2069_v59 = vpack.c.bf16 %v2046_v36, %v2047_v30  ;;  %v2045_v60 = vsel %vm1560_vm10, %v2043_v51, %v2044_v54  ;;  %v2281_v1 = vld [vmem:[%s2940_s18] ss:$0 sm:$0xff] }
 0x690   : > { %v1915_v61 = vpack.c.bf16 %v1897_v22, %v1911_v57  ;;  %2425 = vmatprep.subr.bf16.mxu0 %v2471_v50  ;;  %v2048_v62 = vsel %vm1560_vm10, %v2044_v54, %v2041_v45 }
 0x691   : > { %v2068_v63 = vsel %vm2052_vm14, %v2064_v53, %v2048_v62 }
 0x692   : > { %2421 = vmatprep.mubr.msk.bf16.mxu0 %vm765_vm3, %v1915_v61  ;;  %v2070_v0 = vpack.c.bf16 %v2068_v63, %v2045_v60 }
 0x69a   : > { %2422 = vmatmul.mubr.msk.bf16.vlgmr.msra.gmra.mrb[20].mxu0 %vm765_vm3, %v1916_v58 }
 0x69b   : > { %2426 = vmatpush3.bf16.msra.mxu0 %v2471_v50  ;;  %2427 = vmatprep.mubr.msk.bf16.mxu0 %vm765_vm3, %v2069_v59 }
 0x6a6   : > { %2428 = vmatmul.mubr.msk.bf16.vlgmr.msra.gmra.mrb[20].mxu0 %vm765_vm3, %v2070_v0 }
 0x779   : > { %v2429_v34 = vpop.f32.mrb[20].mxu0 }
 0x77a   : > { %v2144_v49 = vadd.f32 %v2429_v34, %v2281_v1  ;;  %v2117_v2 = vpop.f32.mrb[21].mxu0 }
 0x77b   : > { %v2142_v3 = vadd.f32 %v2281_v1, %v2117_v2  ;;  %v2430_v4 = vpop.f32.mrb[22].mxu0 }
 0x77c   : > { %2149 = vst.msk [vmem:[%s627_s22 + $0x10] sm:$0xff] %vm2146_vm15, %v2144_v49  ;;  %v2145_v5 = vadd.f32 %v2430_v4, %v2281_v1  ;;  %v2120_v6 = vpop.f32.mrb[23].mxu0 }
 0x77d   : > { %2147 = vst.msk [vmem:[%s627_s22] sm:$0xff] %vm2146_vm15, %v2142_v3  ;;  %v2143_v7 = vadd.f32 %v2281_v1, %v2120_v6 }
 0x77e   : > { %2150 = vst.msk [vmem:[%s627_s22 + $0x18] sm:$0xff] %vm2146_vm15, %v2145_v5 }
 0x77f   : > { %2148 = vst.msk [vmem:[%s627_s22 + $0x8] sm:$0xff] %vm2146_vm15, %v2143_v7 }
 0x780 PF: > { %s29_s0 = sadd.s32 1, %s2480_s0  }
 0x781   : > { %p26_p4 = scmp.ge.s32.totalorder %s29_s0, 4  }
 0x783   :  { %28 = sbr.rel (!%p26_p4) target bundleno = 5 (0x5), region = 132 }

</bundles_post_ra>
